<compile_context>
chip_gen: v7x
topology: tpu7x:2x2x1
jax: 0.10.0
libtpu: 0.0.40
codegen_flags: <defaults>
</compile_context>

<pallas_src>
import math
import functools

import numpy as np
import jax
import jax.numpy as jnp
from jax import lax
from jax.experimental import pallas as pl
from jax.experimental.pallas import tpu as pltpu


# ----------------------------------------------------------------------------
# Pallas kernel: one batch *block* (Bb batch elements) per grid step.
# ----------------------------------------------------------------------------
def _rel_att_kernel(q_ref, k_ref, v_ref, p_ref,
                    wq_ref, wk_ref, wv_ref,
                    bq_ref, bk_ref, bv_ref,
                    u_ref, vb_ref, wo_ref, bo_ref,
                    o_ref,
                    *, num_heads, d_k, d_v, t1, t2, pos_shared):
    f32 = jnp.float32
    bf16 = jnp.bfloat16
    H = num_heads
    T1, T2 = t1, t2
    Bb = q_ref.shape[0] // T1
    Lp = p_ref.shape[-2]
    n_bits = (T1 - 1).bit_length()
    assert Lp == T2 + (1 << n_bits) - 1        # wrapper guarantees shift widths
    assert k_ref.shape[0] == Bb * T2

    # --- fused full-width projections: (Bb*T, F) @ (F, H*d), bf16 -> f32 acc --
    q_proj = jnp.dot(q_ref[...], wq_ref[...],
                     preferred_element_type=f32) + bq_ref[...]   # (Bb*T1, H*d_k)
    k_proj = jnp.dot(k_ref[...], wk_ref[...],
                     preferred_element_type=f32) + bk_ref[...]   # (Bb*T2, H*d_k)
    v_proj = jnp.dot(v_ref[...], wv_ref[...],
                     preferred_element_type=f32) + bv_ref[...]   # (Bb*T2, H*d_v)

    # bf16 MXU operands for the per-head score / PV matmuls
    k3 = k_proj.reshape(Bb, T2, H * d_k).astype(bf16)
    v3 = v_proj.reshape(Bb, T2, H * d_v).astype(bf16)
    u_all = u_ref[...]                                           # (1, H*d_k) f32
    vb_all = vb_ref[...]                                         # (1, H*d_k) f32
    p_all = p_ref[...]                                           # bf16

    # --- relative-shift masks, hoisted out of the head loop (no re-broadcast) -
    # BD[b, i, j] = x[b, i, (T1-1-i) + j]; per-row left shift by (T1-1-i),
    # decomposed into ceil(log2(T1)) masked static lane shifts.
    shift_masks = []
    width = Lp
    for bit in range(n_bits):
        amt = 1 << bit
        width -= amt
        row = lax.broadcasted_iota(jnp.int32, (1, T1, width), 1)
        shift_masks.append((amt, width, ((T1 - 1 - row) & amt) != 0))

    scale = 1.0 / math.sqrt(d_k)
    dn2 = (((1,), (1,)), ((), ()))             # 2-D dot, contract last dims
    ctx_heads = []
    # TODO(synk): for num_heads >> 8 move this to lax.fori_loop / a grid axis.
    for h in range(H):
        ks = slice(h * d_k, (h + 1) * d_k)
        vs = slice(h * d_v, (h + 1) * d_v)
        qh = q_proj[:, ks]                                       # (Bb*T1, d_k) f32
        kh = k3[:, :, ks]                                        # (Bb, T2, d_k) bf16
        vh = v3[:, :, vs]                                        # (Bb, T2, d_v) bf16
        qh_u = (qh + u_all[:, ks]).reshape(Bb, T1, d_k).astype(bf16)
        qh_v = (qh + vb_all[:, ks]).astype(bf16)                 # (Bb*T1, d_k)

        # content term AC[b,i,j] = (q_i + u) . k_j   (bf16 MXU, f32 accumulate)
        ac = jnp.einsum('btd,bsd->bts', qh_u, kh,
                        preferred_element_type=f32)              # (Bb, T1, T2)

        # position term before shift: x[b,i,m] = (q_i + v) . p[m]
        if pos_shared:
            x = lax.dot_general(qh_v, p_all[:, ks], dn2,
                                preferred_element_type=f32)      # (Bb*T1, Lp)
            x = x.reshape(Bb, T1, Lp)
        else:
            x = jnp.einsum('btd,bmd->btm', qh_v.reshape(Bb, T1, d_k),
                           p_all[:, :, ks], preferred_element_type=f32)

        # Transformer-XL relative shift (masks precomputed above)
        for amt, w, take in shift_masks:
            x = jnp.where(take, x[:, :, amt:amt + w], x[:, :, :w])
        bd = x[:, :, :T2]                                        # (Bb, T1, T2)

        # softmax over keys (mask=None path), f32 math
        scores = (ac + bd) * scale
        m = jnp.max(scores, axis=-1, keepdims=True)
        e = jnp.exp(scores - m)
        s = jnp.sum(e, axis=-1, keepdims=True)
        attn = (e * pl.reciprocal(s, approx=True)).astype(bf16)

        ctx_heads.append(jnp.einsum('bts,bsd->btd', attn, vh,
                                    preferred_element_type=f32))  # (Bb, T1, d_v)

    # one lane-dense context slab -> single output projection (no scratch slab)
    ctx = jnp.concatenate(ctx_heads, axis=-1)                     # (Bb, T1, H*d_v)
    ctx = ctx.reshape(Bb * T1, H * d_v).astype(bf16)
    o_ref[...] = jnp.dot(ctx, wo_ref[...],
                         preferred_element_type=f32) + bo_ref[...]


# ----------------------------------------------------------------------------
# Wrapper: layout / position-table preparation (glue) + pallas_call
# ----------------------------------------------------------------------------
def _pick_batch_block(B, T1, T2, per_elem_bytes, *, cap=8, vmem_budget=8 << 20):
    """Largest divisor of B (<= cap, VMEM-capped) keeping 8-row block alignment;
    prefer >= 2 grid steps when B > 1 so both v7x TensorCores get work."""
    def ok(d):
        if B % d or d * per_elem_bytes > vmem_budget:
            return False
        return d == B or ((d * T1) % 8 == 0 and (d * T2) % 8 == 0)
    divs = [d for d in range(1, min(B, cap) + 1) if ok(d)]
    if not divs:
        return B
    pref = [d for d in divs if B // d >= 2] or divs
    return max(pref)


def scaled_dot_prod_att_rel_pos_enc_v1(query, key, value, pos_emb, params,
                                       *, num_heads, d_k, d_v,
                                       causal_pos_enc=False, mask=None,
                                       batch_block=None):
    """Eval-mode forward of ScaledDotProdAttRelPosEncV1 (mask=None path)."""
    if mask is not None:
        # TODO(synk): attention masks ((B,T1,T2)/(B,T)) are not implemented.
        raise NotImplementedError("mask is not supported by this Pallas kernel")

    B, T1, F = query.shape
    T2 = key.shape[1]
    pos_B = pos_emb.shape[0]
    assert pos_B in (1, B)
    dt = T2 - T1
    assert dt >= 0, "expects time2 >= time1 (as in the reference module)"
    H = num_heads
    HDk = H * d_k
    HDv = H * d_v
    out_feats = params["w_out"].shape[1]
    f32 = jnp.float32
    bf16 = jnp.bfloat16

    # --- batch-invariant position projection, hoisted out of the kernel ------
    # pos_emb rows are R_{T2-1},...,R_0 -> row m of p_pos has rel offset T2-1-m
    p_pos = pos_emb.astype(f32) @ params["w_p"] + params["b_p"]   # (pos_B,T2,HDk)
    if causal_pos_enc:
        # negative offsets contribute nothing (tril-masked in the module)
        p_neg = jnp.zeros((pos_B, max(T1 - 1, 0), HDk), f32)
    else:
        # module's non-causal embeddings: slice, flip in time, negate even
        # features -- same sinusoidal-pos_emb assumption as the module itself.
        pe_nc = pos_emb[:, dt:, :][:, ::-1, :]
        pe_nc = pe_nc.at[:, :, 0::2].multiply(-1.0)               # rows ~ R_{-s}
        p_neg = pe_nc[:, 1:T1].astype(f32) @ params["w_p"] + params["b_p"]

    # zero-pad rows so the in-kernel log-shift keeps exact widths; ship bf16
    n_bits = (T1 - 1).bit_length()
    Lp = T2 + (1 << n_bits) - 1
    L = T1 + T2 - 1
    p_all = jnp.concatenate(
        [p_pos, p_neg, jnp.zeros((pos_B, Lp - L, HDk), f32)],
        axis=1).astype(bf16)                                      # (pos_B,Lp,HDk)
    pos_shared = pos_B == 1
    p_in = p_all[0] if pos_shared else p_all

    # --- parameter layouts: bf16 MXU operands, f32 biases --------------------
    wq = params["w_q"].astype(bf16)
    wk = params["w_k"].astype(bf16)
    wv = params["w_v"].astype(bf16)
    wo = params["w_out"].astype(bf16)
    bq = params["b_q"].reshape(1, HDk).astype(f32)
    bk = params["b_k"].reshape(1, HDk).astype(f32)
    bv = params["b_v"].reshape(1, HDv).astype(f32)
    bo = params["b_out"].reshape(1, out_feats).astype(f32)
    u = params["u"].reshape(1, HDk).astype(f32)
    vb = params["v"].reshape(1, HDk).astype(f32)

    # flatten (B, T, F) -> (B*T, F) (free, row-major) so projections see Bb*T
    # MXU rows and the input blocks need no in-kernel reshape
    qf = query.reshape(B * T1, F).astype(bf16)
    kf = key.reshape(B * T2, F).astype(bf16)
    vf = value.reshape(B * T2, F).astype(bf16)

    per_elem = 2 * (T1 + 2 * T2) * F + 4 * T1 * out_feats \
        + (2 * Lp * HDk if not pos_shared else 0)
    Bb = batch_block if batch_block is not None else _pick_batch_block(
        B, T1, T2, per_elem)
    assert B % Bb == 0

    def brow(rows):
        return pl.BlockSpec((rows, F), lambda g: (g, 0))

    def const_full(a):
        return pl.BlockSpec(a.shape, lambda g, _n=a.ndim: (0,) * _n)

    p_spec = (const_full(p_in) if pos_shared
              else pl.BlockSpec((Bb, Lp, HDk), lambda g: (g, 0, 0)))

    kernel = functools.partial(_rel_att_kernel, num_heads=H, d_k=d_k, d_v=d_v,
                               t1=T1, t2=T2, pos_shared=pos_shared)

    # TODO(synk): on v7x the constant-index weight specs could additionally use
    # pipeline_mode=pl.Buffered(1) to halve their VMEM residency.
    out_flat = pl.pallas_call(
        kernel,
        out_shape=jax.ShapeDtypeStruct((B * T1, out_feats), f32),
        grid=(B // Bb,),
        in_specs=[
            brow(Bb * T1),                    # query rows
            brow(Bb * T2),                    # key rows
            brow(Bb * T2),                    # value rows
            p_spec,                           # projected rel-pos table (bf16)
            const_full(wq), const_full(wk), const_full(wv),
            const_full(bq), const_full(bk), const_full(bv),
            const_full(u), const_full(vb), const_full(wo), const_full(bo),
        ],
        out_specs=pl.BlockSpec((Bb * T1, out_feats), lambda g: (g, 0)),
        compiler_params=pltpu.CompilerParams(
            dimension_semantics=("parallel",),
            vmem_limit_bytes=48 * 1024 * 1024),
    )(qf, kf, vf, p_in, wq, wk, wv, bq, bk, bv, u, vb, wo, bo)
    return out_flat.reshape(B, T1, out_feats)


# ----------------------------------------------------------------------------
# Pure-JAX reference mirroring the PyTorch forward (pad/view rel-shift trick)
# ----------------------------------------------------------------------------
def reference_forward(query, key, value, pos_emb, params,
                      *, num_heads, d_k, d_v, causal_pos_enc=False):
    B, T1, F = query.shape
    T2 = key.shape[1]
    H = num_heads
    pos_B = pos_emb.shape[0]

    def lin(x, w, b):
        return x @ w + b

    q = lin(query, params["w_q"], params["b_q"]).reshape(B, T1, H, d_k)
    k = lin(key, params["w_k"], params["b_k"]).reshape(B, T2, H, d_k)
    v = lin(value, params["w_v"], params["b_v"]).reshape(B, T2, H, d_v)
    q = q.transpose(0, 2, 1, 3)
    k = k.transpose(0, 2, 1, 3)
    v = v.transpose(0, 2, 1, 3)

    p = lin(pos_emb, params["w_p"], params["b_p"]).reshape(pos_B, T2, H, d_k)
    p = jnp.broadcast_to(p.transpose(0, 2, 1, 3), (B, H, T2, d_k))

    qT = q.transpose(0, 2, 1, 3)
    q_plus_u = (qT + params["u"]).transpose(0, 2, 1, 3)
    q_plus_v = (qT + params["v"]).transpose(0, 2, 1, 3)

    AC = jnp.einsum("bhtd,bhsd->bhts", q_plus_u, k)
    BDtilde = jnp.einsum("bhtd,bhsd->bhts", q_plus_v, p)

    def left_shift(x):
        b, h, t1, t2 = x.shape
        x_pad = jnp.pad(x, ((0, 0), (0, 0), (0, 0), (1, 0)))
        x_pad = x_pad.reshape(b, h, t2 + 1, t1)
        xs = x_pad[:, :, 1:].reshape(b, h, t1, t2)
        return xs * jnp.tril(jnp.ones((t1, t2), xs.dtype), t2 - t1)

    def right_shift(x):
        b, h, t1, t2 = x.shape
        x_pad = jnp.pad(x, ((0, 0), (0, 0), (0, 0), (0, 1)))
        x_pad = x_pad.reshape(b, h, t2 + 1, t1)
        xs = x_pad[:, :, :-1].reshape(b, h, t1, t2)
        return xs * jnp.triu(jnp.ones((t1, t2), xs.dtype), t2 - t1 + 1)

    BD = left_shift(BDtilde)
    if not causal_pos_enc:
        dt = T2 - T1
        pe_nc = pos_emb[:, dt:, :][:, ::-1, :]
        pe_nc = pe_nc.at[:, :, 0::2].multiply(-1.0)
        p_nc = lin(pe_nc, params["w_p"], params["b_p"]).reshape(pos_B, T1, H, d_k)
        p_nc = jnp.broadcast_to(p_nc.transpose(0, 2, 1, 3), (B, H, T1, d_k))
        BDtilde_nc = jnp.einsum("bhtd,bhsd->bhts", q_plus_v, p_nc)
        BD = BD.at[:, :, :, dt:].add(right_shift(BDtilde_nc))

    scores = (AC + BD) / math.sqrt(d_k)
    attn = jax.nn.softmax(scores, axis=-1)
    x = jnp.einsum("bhts,bhsd->bhtd", attn, v)
    x = x.transpose(0, 2, 1, 3).reshape(B, T1, H * d_v)
    return x @ params["w_out"] + params["b_out"]


if __name__ == "__main__":
    B, T1, T2 = 4, 8, 16
    in_feats, out_feats = 32, 32
    H, d_k, d_v = 4, 8, 8

    keys = jax.random.split(jax.random.PRNGKey(0), 16)

    def xavier(k, shape):
        lim = math.sqrt(6.0 / (shape[0] + shape[-1]))
        return jax.random.uniform(k, shape, jnp.float32, -lim, lim)

    params = {
        "w_q": xavier(keys[0], (in_feats, H * d_k)),
        "b_q": jax.random.normal(keys[1], (H * d_k,), jnp.float32) * 0.01,
        "w_k": xavier(keys[2], (in_feats, H * d_k)),
        "b_k": jax.random.normal(keys[3], (H * d_k,), jnp.float32) * 0.01,
        "w_v": xavier(keys[4], (in_feats, H * d_v)),
        "b_v": jax.random.normal(keys[5], (H * d_v,), jnp.float32) * 0.01,
        "w_p": xavier(keys[6], (in_feats, H * d_k)),
        "b_p": jax.random.normal(keys[7], (H * d_k,), jnp.float32) * 0.01,
        "w_out": xavier(keys[8], (H * d_v, out_feats)),
        "b_out": jax.random.normal(keys[9], (out_feats,), jnp.float32) * 0.01,
        "u": xavier(keys[10], (H, d_k)),
        "v": xavier(keys[11], (H, d_k)),
    }

    query = jax.random.normal(keys[12], (B, T1, in_feats), jnp.float32)
    key_in = jax.random.normal(keys[13], (B, T2, in_feats), jnp.float32)
    value = jax.random.normal(keys[14], (B, T2, in_feats), jnp.float32)
    pos_emb = jax.random.normal(keys[15], (1, T2, in_feats), jnp.float32)

    # Tolerance is loose because every matmul in the chain (projections, scores,
    # PV, output) now takes bf16 operands (f32 accumulation), per the perf
    # review; the f32 reference therefore differs at the bf16 level.
    for causal in (False, True):
        out = scaled_dot_prod_att_rel_pos_enc_v1(
            query, key_in, value, pos_emb, params,
            num_heads=H, d_k=d_k, d_v=d_v, causal_pos_enc=causal)
        out = jax.block_until_ready(out)

        with jax.default_matmul_precision("float32"):
            ref = reference_forward(query, key_in, value, pos_emb, params,
                                    num_heads=H, d_k=d_k, d_v=d_v,
                                    causal_pos_enc=causal)
        ref = jax.block_until_ready(ref)

        assert out.shape == (B, T1, out_feats)
        np.testing.assert_allclose(np.asarray(out), np.asarray(ref),
                                   rtol=1e-1, atol=1e-1)

    print("KERNEL_OK")
</pallas_src>

<mosaic_0001>
module attributes {stable_mosaic.version = 11 : i64} {
  func.func @_rel_att_kernel(%arg0: i32, %arg1: memref<16x32xbf16, #tpu.memory_space<vmem>>, %arg2: memref<32x32xbf16, #tpu.memory_space<vmem>>, %arg3: memref<32x32xbf16, #tpu.memory_space<vmem>>, %arg4: memref<23x32xbf16, #tpu.memory_space<vmem>>, %arg5: memref<32x32xbf16, #tpu.memory_space<vmem>>, %arg6: memref<32x32xbf16, #tpu.memory_space<vmem>>, %arg7: memref<32x32xbf16, #tpu.memory_space<vmem>>, %arg8: memref<1x32xf32, #tpu.memory_space<vmem>>, %arg9: memref<1x32xf32, #tpu.memory_space<vmem>>, %arg10: memref<1x32xf32, #tpu.memory_space<vmem>>, %arg11: memref<1x32xf32, #tpu.memory_space<vmem>>, %arg12: memref<1x32xf32, #tpu.memory_space<vmem>>, %arg13: memref<32x32xbf16, #tpu.memory_space<vmem>>, %arg14: memref<1x32xf32, #tpu.memory_space<vmem>>, %arg15: memref<16x32xf32, #tpu.memory_space<vmem>>) attributes {dimension_semantics = [#tpu.dimension_semantics<parallel>], iteration_bounds = array<i64: 2>, scalar_prefetch = 0 : i64, scratch_operands = 0 : i64, tpu.core_type = #tpu.core_type<tc>, window_params = [{transform_indices = @transform_0, window_bounds = array<i64: 16, 32>}, {transform_indices = @transform_1, window_bounds = array<i64: 32, 32>}, {transform_indices = @transform_2, window_bounds = array<i64: 32, 32>}, {pipeline_mode = #tpu.pipeline_mode<synchronous>, transform_indices = @transform_3, window_bounds = array<i64: 23, 32>}, {pipeline_mode = #tpu.pipeline_mode<synchronous>, transform_indices = @transform_4, window_bounds = array<i64: 32, 32>}, {pipeline_mode = #tpu.pipeline_mode<synchronous>, transform_indices = @transform_5, window_bounds = array<i64: 32, 32>}, {pipeline_mode = #tpu.pipeline_mode<synchronous>, transform_indices = @transform_6, window_bounds = array<i64: 32, 32>}, {pipeline_mode = #tpu.pipeline_mode<synchronous>, transform_indices = @transform_7, window_bounds = array<i64: 1, 32>}, {pipeline_mode = #tpu.pipeline_mode<synchronous>, transform_indices = @transform_8, window_bounds = array<i64: 1, 32>}, {pipeline_mode = #tpu.pipeline_mode<synchronous>, transform_indices = @transform_9, window_bounds = array<i64: 1, 32>}, {pipeline_mode = #tpu.pipeline_mode<synchronous>, transform_indices = @transform_10, window_bounds = array<i64: 1, 32>}, {pipeline_mode = #tpu.pipeline_mode<synchronous>, transform_indices = @transform_11, window_bounds = array<i64: 1, 32>}, {pipeline_mode = #tpu.pipeline_mode<synchronous>, transform_indices = @transform_12, window_bounds = array<i64: 32, 32>}, {pipeline_mode = #tpu.pipeline_mode<synchronous>, transform_indices = @transform_13, window_bounds = array<i64: 1, 32>}, {transform_indices = @transform_14, window_bounds = array<i64: 16, 32>}]} {
    %c0 = arith.constant 0 : index
    %c0_0 = arith.constant 0 : index
    %0 = vector.load %arg1[%c0, %c0_0] : memref<16x32xbf16, #tpu.memory_space<vmem>>, vector<16x32xbf16>
    %c0_1 = arith.constant 0 : index
    %c0_2 = arith.constant 0 : index
    %1 = vector.load %arg5[%c0_1, %c0_2] : memref<32x32xbf16, #tpu.memory_space<vmem>>, vector<32x32xbf16>
    %cst = arith.constant dense<0.000000e+00> : vector<16x32xf32>
    %2 = tpu.matmul %0, %1, %cst {dimension_numbers = #tpu.dot_dimension_numbers<[1], [0], [0], [1], [0, 0, 1, 1], [], []>} : vector<16x32xbf16>, vector<32x32xbf16>, vector<16x32xf32> -> vector<16x32xf32>
    %c0_3 = arith.constant 0 : index
    %c0_4 = arith.constant 0 : index
    %3 = vector.load %arg8[%c0_3, %c0_4] : memref<1x32xf32, #tpu.memory_space<vmem>>, vector<1x32xf32>
    %4 = vector.broadcast %3 : vector<1x32xf32> to vector<16x32xf32>
    %5 = arith.addf %2, %4 : vector<16x32xf32>
    %c0_5 = arith.constant 0 : index
    %c0_6 = arith.constant 0 : index
    %6 = vector.load %arg2[%c0_5, %c0_6] : memref<32x32xbf16, #tpu.memory_space<vmem>>, vector<32x32xbf16>
    %c0_7 = arith.constant 0 : index
    %c0_8 = arith.constant 0 : index
    %7 = vector.load %arg6[%c0_7, %c0_8] : memref<32x32xbf16, #tpu.memory_space<vmem>>, vector<32x32xbf16>
    %cst_9 = arith.constant dense<0.000000e+00> : vector<32x32xf32>
    %8 = tpu.matmul %6, %7, %cst_9 {dimension_numbers = #tpu.dot_dimension_numbers<[1], [0], [0], [1], [0, 0, 1, 1], [], []>} : vector<32x32xbf16>, vector<32x32xbf16>, vector<32x32xf32> -> vector<32x32xf32>
    %c0_10 = arith.constant 0 : index
    %c0_11 = arith.constant 0 : index
    %9 = vector.load %arg9[%c0_10, %c0_11] : memref<1x32xf32, #tpu.memory_space<vmem>>, vector<1x32xf32>
    %10 = vector.broadcast %9 : vector<1x32xf32> to vector<32x32xf32>
    %11 = arith.addf %8, %10 : vector<32x32xf32>
    %c0_12 = arith.constant 0 : index
    %c0_13 = arith.constant 0 : index
    %12 = vector.load %arg3[%c0_12, %c0_13] : memref<32x32xbf16, #tpu.memory_space<vmem>>, vector<32x32xbf16>
    %c0_14 = arith.constant 0 : index
    %c0_15 = arith.constant 0 : index
    %13 = vector.load %arg7[%c0_14, %c0_15] : memref<32x32xbf16, #tpu.memory_space<vmem>>, vector<32x32xbf16>
    %cst_16 = arith.constant dense<0.000000e+00> : vector<32x32xf32>
    %14 = tpu.matmul %12, %13, %cst_16 {dimension_numbers = #tpu.dot_dimension_numbers<[1], [0], [0], [1], [0, 0, 1, 1], [], []>} : vector<32x32xbf16>, vector<32x32xbf16>, vector<32x32xf32> -> vector<32x32xf32>
    %c0_17 = arith.constant 0 : index
    %c0_18 = arith.constant 0 : index
    %15 = vector.load %arg10[%c0_17, %c0_18] : memref<1x32xf32, #tpu.memory_space<vmem>>, vector<1x32xf32>
    %16 = vector.broadcast %15 : vector<1x32xf32> to vector<32x32xf32>
    %17 = arith.addf %14, %16 : vector<32x32xf32>
    %18 = vector.shape_cast %11 : vector<32x32xf32> to vector<2x16x32xf32>
    %19 = arith.truncf %18 : vector<2x16x32xf32> to vector<2x16x32xbf16>
    %20 = vector.shape_cast %17 : vector<32x32xf32> to vector<2x16x32xf32>
    %21 = arith.truncf %20 : vector<2x16x32xf32> to vector<2x16x32xbf16>
    %c0_19 = arith.constant 0 : index
    %c0_20 = arith.constant 0 : index
    %22 = vector.load %arg11[%c0_19, %c0_20] : memref<1x32xf32, #tpu.memory_space<vmem>>, vector<1x32xf32>
    %c0_21 = arith.constant 0 : index
    %c0_22 = arith.constant 0 : index
    %23 = vector.load %arg12[%c0_21, %c0_22] : memref<1x32xf32, #tpu.memory_space<vmem>>, vector<1x32xf32>
    %c0_23 = arith.constant 0 : index
    %c0_24 = arith.constant 0 : index
    %24 = vector.load %arg4[%c0_23, %c0_24] : memref<23x32xbf16, #tpu.memory_space<vmem>>, vector<23x32xbf16>
    %25 = tpu.iota {dimensions = array<i32: 1>} : vector<1x8x22xi32>
    %c7_i32 = arith.constant 7 : i32
    %26 = vector.broadcast %c7_i32 : i32 to vector<1x8x22xi32>
    %27 = arith.subi %26, %25 : vector<1x8x22xi32>
    %c1_i32 = arith.constant 1 : i32
    %28 = vector.broadcast %c1_i32 : i32 to vector<1x8x22xi32>
    %29 = arith.andi %27, %28 : vector<1x8x22xi32>
    %c0_i32 = arith.constant 0 : i32
    %30 = vector.broadcast %c0_i32 : i32 to vector<1x8x22xi32>
    %31 = arith.cmpi ne, %29, %30 : vector<1x8x22xi32>
    %32 = tpu.iota {dimensions = array<i32: 1>} : vector<1x8x20xi32>
    %c7_i32_25 = arith.constant 7 : i32
    %33 = vector.broadcast %c7_i32_25 : i32 to vector<1x8x20xi32>
    %34 = arith.subi %33, %32 : vector<1x8x20xi32>
    %c2_i32 = arith.constant 2 : i32
    %35 = vector.broadcast %c2_i32 : i32 to vector<1x8x20xi32>
    %36 = arith.andi %34, %35 : vector<1x8x20xi32>
    %c0_i32_26 = arith.constant 0 : i32
    %37 = vector.broadcast %c0_i32_26 : i32 to vector<1x8x20xi32>
    %38 = arith.cmpi ne, %36, %37 : vector<1x8x20xi32>
    %39 = tpu.iota {dimensions = array<i32: 1>} : vector<1x8x16xi32>
    %c7_i32_27 = arith.constant 7 : i32
    %40 = vector.broadcast %c7_i32_27 : i32 to vector<1x8x16xi32>
    %41 = arith.subi %40, %39 : vector<1x8x16xi32>
    %c4_i32 = arith.constant 4 : i32
    %42 = vector.broadcast %c4_i32 : i32 to vector<1x8x16xi32>
    %43 = arith.andi %41, %42 : vector<1x8x16xi32>
    %c0_i32_28 = arith.constant 0 : i32
    %44 = vector.broadcast %c0_i32_28 : i32 to vector<1x8x16xi32>
    %45 = arith.cmpi ne, %43, %44 : vector<1x8x16xi32>
    %46 = vector.extract_strided_slice %5 {offsets = [0, 0], sizes = [16, 8], strides = [1, 1]} : vector<16x32xf32> to vector<16x8xf32>
    %47 = vector.extract_strided_slice %19 {offsets = [0, 0, 0], sizes = [2, 16, 8], strides = [1, 1, 1]} : vector<2x16x32xbf16> to vector<2x16x8xbf16>
    %48 = vector.extract_strided_slice %21 {offsets = [0, 0, 0], sizes = [2, 16, 8], strides = [1, 1, 1]} : vector<2x16x32xbf16> to vector<2x16x8xbf16>
    %49 = vector.extract_strided_slice %22 {offsets = [0, 0], sizes = [1, 8], strides = [1, 1]} : vector<1x32xf32> to vector<1x8xf32>
    %50 = vector.broadcast %49 : vector<1x8xf32> to vector<16x8xf32>
    %51 = arith.addf %46, %50 : vector<16x8xf32>
    %52 = vector.shape_cast %51 : vector<16x8xf32> to vector<2x8x8xf32>
    %53 = arith.truncf %52 : vector<2x8x8xf32> to vector<2x8x8xbf16>
    %54 = vector.extract_strided_slice %23 {offsets = [0, 0], sizes = [1, 8], strides = [1, 1]} : vector<1x32xf32> to vector<1x8xf32>
    %55 = vector.broadcast %54 : vector<1x8xf32> to vector<16x8xf32>
    %56 = arith.addf %46, %55 : vector<16x8xf32>
    %57 = arith.truncf %56 : vector<16x8xf32> to vector<16x8xbf16>
    "tpu.trace_start"() <{level = 10 : i32, message = "btd,bsd->bts"}> : () -> ()
    %cst_29 = arith.constant dense<0.000000e+00> : vector<2x8x16xf32>
    %58 = tpu.matmul %53, %47, %cst_29 {dimension_numbers = #tpu.dot_dimension_numbers<[2], [2], [1], [1], [0, 0, 0, 1, 1, 1], [0], [0]>} : vector<2x8x8xbf16>, vector<2x16x8xbf16>, vector<2x8x16xf32> -> vector<2x8x16xf32>
    "tpu.trace_stop"() : () -> ()
    %59 = vector.extract_strided_slice %24 {offsets = [0, 0], sizes = [23, 8], strides = [1, 1]} : vector<23x32xbf16> to vector<23x8xbf16>
    %cst_30 = arith.constant dense<0.000000e+00> : vector<16x23xf32>
    %60 = tpu.matmul %57, %59, %cst_30 {dimension_numbers = #tpu.dot_dimension_numbers<[1], [1], [0], [0], [0, 0, 1, 0], [], []>} : vector<16x8xbf16>, vector<23x8xbf16>, vector<16x23xf32> -> vector<16x23xf32>
    %61 = vector.shape_cast %60 : vector<16x23xf32> to vector<2x8x23xf32>
    %62 = vector.extract_strided_slice %61 {offsets = [0, 0, 1], sizes = [2, 8, 22], strides = [1, 1, 1]} : vector<2x8x23xf32> to vector<2x8x22xf32>
    %63 = vector.extract_strided_slice %61 {offsets = [0, 0, 0], sizes = [2, 8, 22], strides = [1, 1, 1]} : vector<2x8x23xf32> to vector<2x8x22xf32>
    %64 = vector.shape_cast %31 : vector<1x8x22xi1> to vector<1x8x22xi1>
    %65 = vector.broadcast %64 : vector<1x8x22xi1> to vector<2x8x22xi1>
    %66 = arith.select %65, %62, %63 : vector<2x8x22xi1>, vector<2x8x22xf32>
    %67 = vector.extract_strided_slice %66 {offsets = [0, 0, 2], sizes = [2, 8, 20], strides = [1, 1, 1]} : vector<2x8x22xf32> to vector<2x8x20xf32>
    %68 = vector.extract_strided_slice %66 {offsets = [0, 0, 0], sizes = [2, 8, 20], strides = [1, 1, 1]} : vector<2x8x22xf32> to vector<2x8x20xf32>
    %69 = vector.shape_cast %38 : vector<1x8x20xi1> to vector<1x8x20xi1>
    %70 = vector.broadcast %69 : vector<1x8x20xi1> to vector<2x8x20xi1>
    %71 = arith.select %70, %67, %68 : vector<2x8x20xi1>, vector<2x8x20xf32>
    %72 = vector.extract_strided_slice %71 {offsets = [0, 0, 4], sizes = [2, 8, 16], strides = [1, 1, 1]} : vector<2x8x20xf32> to vector<2x8x16xf32>
    %73 = vector.extract_strided_slice %71 {offsets = [0, 0, 0], sizes = [2, 8, 16], strides = [1, 1, 1]} : vector<2x8x20xf32> to vector<2x8x16xf32>
    %74 = vector.shape_cast %45 : vector<1x8x16xi1> to vector<1x8x16xi1>
    %75 = vector.broadcast %74 : vector<1x8x16xi1> to vector<2x8x16xi1>
    %76 = arith.select %75, %72, %73 : vector<2x8x16xi1>, vector<2x8x16xf32>
    %77 = arith.addf %58, %76 : vector<2x8x16xf32>
    %cst_31 = arith.constant 0.353553385 : f32
    %78 = vector.broadcast %cst_31 : f32 to vector<2x8x16xf32>
    %79 = arith.mulf %77, %78 : vector<2x8x16xf32>
    %cst_32 = arith.constant dense<0xFF800000> : vector<2x8xf32>
    %80 = vector.multi_reduction <maximumf>, %79, %cst_32 [2] : vector<2x8x16xf32> to vector<2x8xf32>
    %81 = vector.shape_cast %80 : vector<2x8xf32> to vector<2x8x1xf32>
    %82 = vector.broadcast %81 : vector<2x8x1xf32> to vector<2x8x16xf32>
    %83 = arith.subf %79, %82 : vector<2x8x16xf32>
    %84 = math.exp %83 : vector<2x8x16xf32>
    %cst_33 = arith.constant dense<0.000000e+00> : vector<2x8xf32>
    %85 = vector.multi_reduction <add>, %84, %cst_33 [2] : vector<2x8x16xf32> to vector<2x8xf32>
    %86 = vector.shape_cast %85 : vector<2x8xf32> to vector<2x8x1xf32>
    %87 = tpu.reciprocal %86 {approx = true} : vector<2x8x1xf32> -> vector<2x8x1xf32>
    %88 = vector.broadcast %87 : vector<2x8x1xf32> to vector<2x8x16xf32>
    %89 = arith.mulf %84, %88 : vector<2x8x16xf32>
    %90 = arith.truncf %89 : vector<2x8x16xf32> to vector<2x8x16xbf16>
    "tpu.trace_start"() <{level = 10 : i32, message = "bts,bsd->btd"}> : () -> ()
    %cst_34 = arith.constant dense<0.000000e+00> : vector<2x8x8xf32>
    %91 = tpu.matmul %90, %48, %cst_34 {dimension_numbers = #tpu.dot_dimension_numbers<[2], [1], [1], [2], [0, 0, 0, 1, 1, 2], [0], [0]>} : vector<2x8x16xbf16>, vector<2x16x8xbf16>, vector<2x8x8xf32> -> vector<2x8x8xf32>
    "tpu.trace_stop"() : () -> ()
    %92 = vector.extract_strided_slice %5 {offsets = [0, 8], sizes = [16, 8], strides = [1, 1]} : vector<16x32xf32> to vector<16x8xf32>
    %93 = vector.extract_strided_slice %19 {offsets = [0, 0, 8], sizes = [2, 16, 8], strides = [1, 1, 1]} : vector<2x16x32xbf16> to vector<2x16x8xbf16>
    %94 = vector.extract_strided_slice %21 {offsets = [0, 0, 8], sizes = [2, 16, 8], strides = [1, 1, 1]} : vector<2x16x32xbf16> to vector<2x16x8xbf16>
    %95 = vector.extract_strided_slice %22 {offsets = [0, 8], sizes = [1, 8], strides = [1, 1]} : vector<1x32xf32> to vector<1x8xf32>
    %96 = vector.broadcast %95 : vector<1x8xf32> to vector<16x8xf32>
    %97 = arith.addf %92, %96 : vector<16x8xf32>
    %98 = vector.shape_cast %97 : vector<16x8xf32> to vector<2x8x8xf32>
    %99 = arith.truncf %98 : vector<2x8x8xf32> to vector<2x8x8xbf16>
    %100 = vector.extract_strided_slice %23 {offsets = [0, 8], sizes = [1, 8], strides = [1, 1]} : vector<1x32xf32> to vector<1x8xf32>
    %101 = vector.broadcast %100 : vector<1x8xf32> to vector<16x8xf32>
    %102 = arith.addf %92, %101 : vector<16x8xf32>
    %103 = arith.truncf %102 : vector<16x8xf32> to vector<16x8xbf16>
    "tpu.trace_start"() <{level = 10 : i32, message = "btd,bsd->bts"}> : () -> ()
    %cst_35 = arith.constant dense<0.000000e+00> : vector<2x8x16xf32>
    %104 = tpu.matmul %99, %93, %cst_35 {dimension_numbers = #tpu.dot_dimension_numbers<[2], [2], [1], [1], [0, 0, 0, 1, 1, 1], [0], [0]>} : vector<2x8x8xbf16>, vector<2x16x8xbf16>, vector<2x8x16xf32> -> vector<2x8x16xf32>
    "tpu.trace_stop"() : () -> ()
    %105 = vector.extract_strided_slice %24 {offsets = [0, 8], sizes = [23, 8], strides = [1, 1]} : vector<23x32xbf16> to vector<23x8xbf16>
    %cst_36 = arith.constant dense<0.000000e+00> : vector<16x23xf32>
    %106 = tpu.matmul %103, %105, %cst_36 {dimension_numbers = #tpu.dot_dimension_numbers<[1], [1], [0], [0], [0, 0, 1, 0], [], []>} : vector<16x8xbf16>, vector<23x8xbf16>, vector<16x23xf32> -> vector<16x23xf32>
    %107 = vector.shape_cast %106 : vector<16x23xf32> to vector<2x8x23xf32>
    %108 = vector.extract_strided_slice %107 {offsets = [0, 0, 1], sizes = [2, 8, 22], strides = [1, 1, 1]} : vector<2x8x23xf32> to vector<2x8x22xf32>
    %109 = vector.extract_strided_slice %107 {offsets = [0, 0, 0], sizes = [2, 8, 22], strides = [1, 1, 1]} : vector<2x8x23xf32> to vector<2x8x22xf32>
    %110 = vector.shape_cast %31 : vector<1x8x22xi1> to vector<1x8x22xi1>
    %111 = vector.broadcast %110 : vector<1x8x22xi1> to vector<2x8x22xi1>
    %112 = arith.select %111, %108, %109 : vector<2x8x22xi1>, vector<2x8x22xf32>
    %113 = vector.extract_strided_slice %112 {offsets = [0, 0, 2], sizes = [2, 8, 20], strides = [1, 1, 1]} : vector<2x8x22xf32> to vector<2x8x20xf32>
    %114 = vector.extract_strided_slice %112 {offsets = [0, 0, 0], sizes = [2, 8, 20], strides = [1, 1, 1]} : vector<2x8x22xf32> to vector<2x8x20xf32>
    %115 = vector.shape_cast %38 : vector<1x8x20xi1> to vector<1x8x20xi1>
    %116 = vector.broadcast %115 : vector<1x8x20xi1> to vector<2x8x20xi1>
    %117 = arith.select %116, %113, %114 : vector<2x8x20xi1>, vector<2x8x20xf32>
    %118 = vector.extract_strided_slice %117 {offsets = [0, 0, 4], sizes = [2, 8, 16], strides = [1, 1, 1]} : vector<2x8x20xf32> to vector<2x8x16xf32>
    %119 = vector.extract_strided_slice %117 {offsets = [0, 0, 0], sizes = [2, 8, 16], strides = [1, 1, 1]} : vector<2x8x20xf32> to vector<2x8x16xf32>
    %120 = vector.shape_cast %45 : vector<1x8x16xi1> to vector<1x8x16xi1>
    %121 = vector.broadcast %120 : vector<1x8x16xi1> to vector<2x8x16xi1>
    %122 = arith.select %121, %118, %119 : vector<2x8x16xi1>, vector<2x8x16xf32>
    %123 = arith.addf %104, %122 : vector<2x8x16xf32>
    %cst_37 = arith.constant 0.353553385 : f32
    %124 = vector.broadcast %cst_37 : f32 to vector<2x8x16xf32>
    %125 = arith.mulf %123, %124 : vector<2x8x16xf32>
    %cst_38 = arith.constant dense<0xFF800000> : vector<2x8xf32>
    %126 = vector.multi_reduction <maximumf>, %125, %cst_38 [2] : vector<2x8x16xf32> to vector<2x8xf32>
    %127 = vector.shape_cast %126 : vector<2x8xf32> to vector<2x8x1xf32>
    %128 = vector.broadcast %127 : vector<2x8x1xf32> to vector<2x8x16xf32>
    %129 = arith.subf %125, %128 : vector<2x8x16xf32>
    %130 = math.exp %129 : vector<2x8x16xf32>
    %cst_39 = arith.constant dense<0.000000e+00> : vector<2x8xf32>
    %131 = vector.multi_reduction <add>, %130, %cst_39 [2] : vector<2x8x16xf32> to vector<2x8xf32>
    %132 = vector.shape_cast %131 : vector<2x8xf32> to vector<2x8x1xf32>
    %133 = tpu.reciprocal %132 {approx = true} : vector<2x8x1xf32> -> vector<2x8x1xf32>
    %134 = vector.broadcast %133 : vector<2x8x1xf32> to vector<2x8x16xf32>
    %135 = arith.mulf %130, %134 : vector<2x8x16xf32>
    %136 = arith.truncf %135 : vector<2x8x16xf32> to vector<2x8x16xbf16>
    "tpu.trace_start"() <{level = 10 : i32, message = "bts,bsd->btd"}> : () -> ()
    %cst_40 = arith.constant dense<0.000000e+00> : vector<2x8x8xf32>
    %137 = tpu.matmul %136, %94, %cst_40 {dimension_numbers = #tpu.dot_dimension_numbers<[2], [1], [1], [2], [0, 0, 0, 1, 1, 2], [0], [0]>} : vector<2x8x16xbf16>, vector<2x16x8xbf16>, vector<2x8x8xf32> -> vector<2x8x8xf32>
    "tpu.trace_stop"() : () -> ()
    %138 = vector.extract_strided_slice %5 {offsets = [0, 16], sizes = [16, 8], strides = [1, 1]} : vector<16x32xf32> to vector<16x8xf32>
    %139 = vector.extract_strided_slice %19 {offsets = [0, 0, 16], sizes = [2, 16, 8], strides = [1, 1, 1]} : vector<2x16x32xbf16> to vector<2x16x8xbf16>
    %140 = vector.extract_strided_slice %21 {offsets = [0, 0, 16], sizes = [2, 16, 8], strides = [1, 1, 1]} : vector<2x16x32xbf16> to vector<2x16x8xbf16>
    %141 = vector.extract_strided_slice %22 {offsets = [0, 16], sizes = [1, 8], strides = [1, 1]} : vector<1x32xf32> to vector<1x8xf32>
    %142 = vector.broadcast %141 : vector<1x8xf32> to vector<16x8xf32>
    %143 = arith.addf %138, %142 : vector<16x8xf32>
    %144 = vector.shape_cast %143 : vector<16x8xf32> to vector<2x8x8xf32>
    %145 = arith.truncf %144 : vector<2x8x8xf32> to vector<2x8x8xbf16>
    %146 = vector.extract_strided_slice %23 {offsets = [0, 16], sizes = [1, 8], strides = [1, 1]} : vector<1x32xf32> to vector<1x8xf32>
    %147 = vector.broadcast %146 : vector<1x8xf32> to vector<16x8xf32>
    %148 = arith.addf %138, %147 : vector<16x8xf32>
    %149 = arith.truncf %148 : vector<16x8xf32> to vector<16x8xbf16>
    "tpu.trace_start"() <{level = 10 : i32, message = "btd,bsd->bts"}> : () -> ()
    %cst_41 = arith.constant dense<0.000000e+00> : vector<2x8x16xf32>
    %150 = tpu.matmul %145, %139, %cst_41 {dimension_numbers = #tpu.dot_dimension_numbers<[2], [2], [1], [1], [0, 0, 0, 1, 1, 1], [0], [0]>} : vector<2x8x8xbf16>, vector<2x16x8xbf16>, vector<2x8x16xf32> -> vector<2x8x16xf32>
    "tpu.trace_stop"() : () -> ()
    %151 = vector.extract_strided_slice %24 {offsets = [0, 16], sizes = [23, 8], strides = [1, 1]} : vector<23x32xbf16> to vector<23x8xbf16>
    %cst_42 = arith.constant dense<0.000000e+00> : vector<16x23xf32>
    %152 = tpu.matmul %149, %151, %cst_42 {dimension_numbers = #tpu.dot_dimension_numbers<[1], [1], [0], [0], [0, 0, 1, 0], [], []>} : vector<16x8xbf16>, vector<23x8xbf16>, vector<16x23xf32> -> vector<16x23xf32>
    %153 = vector.shape_cast %152 : vector<16x23xf32> to vector<2x8x23xf32>
    %154 = vector.extract_strided_slice %153 {offsets = [0, 0, 1], sizes = [2, 8, 22], strides = [1, 1, 1]} : vector<2x8x23xf32> to vector<2x8x22xf32>
    %155 = vector.extract_strided_slice %153 {offsets = [0, 0, 0], sizes = [2, 8, 22], strides = [1, 1, 1]} : vector<2x8x23xf32> to vector<2x8x22xf32>
    %156 = vector.shape_cast %31 : vector<1x8x22xi1> to vector<1x8x22xi1>
    %157 = vector.broadcast %156 : vector<1x8x22xi1> to vector<2x8x22xi1>
    %158 = arith.select %157, %154, %155 : vector<2x8x22xi1>, vector<2x8x22xf32>
    %159 = vector.extract_strided_slice %158 {offsets = [0, 0, 2], sizes = [2, 8, 20], strides = [1, 1, 1]} : vector<2x8x22xf32> to vector<2x8x20xf32>
    %160 = vector.extract_strided_slice %158 {offsets = [0, 0, 0], sizes = [2, 8, 20], strides = [1, 1, 1]} : vector<2x8x22xf32> to vector<2x8x20xf32>
    %161 = vector.shape_cast %38 : vector<1x8x20xi1> to vector<1x8x20xi1>
    %162 = vector.broadcast %161 : vector<1x8x20xi1> to vector<2x8x20xi1>
    %163 = arith.select %162, %159, %160 : vector<2x8x20xi1>, vector<2x8x20xf32>
    %164 = vector.extract_strided_slice %163 {offsets = [0, 0, 4], sizes = [2, 8, 16], strides = [1, 1, 1]} : vector<2x8x20xf32> to vector<2x8x16xf32>
    %165 = vector.extract_strided_slice %163 {offsets = [0, 0, 0], sizes = [2, 8, 16], strides = [1, 1, 1]} : vector<2x8x20xf32> to vector<2x8x16xf32>
    %166 = vector.shape_cast %45 : vector<1x8x16xi1> to vector<1x8x16xi1>
    %167 = vector.broadcast %166 : vector<1x8x16xi1> to vector<2x8x16xi1>
    %168 = arith.select %167, %164, %165 : vector<2x8x16xi1>, vector<2x8x16xf32>
    %169 = arith.addf %150, %168 : vector<2x8x16xf32>
    %cst_43 = arith.constant 0.353553385 : f32
    %170 = vector.broadcast %cst_43 : f32 to vector<2x8x16xf32>
    %171 = arith.mulf %169, %170 : vector<2x8x16xf32>
    %cst_44 = arith.constant dense<0xFF800000> : vector<2x8xf32>
    %172 = vector.multi_reduction <maximumf>, %171, %cst_44 [2] : vector<2x8x16xf32> to vector<2x8xf32>
    %173 = vector.shape_cast %172 : vector<2x8xf32> to vector<2x8x1xf32>
    %174 = vector.broadcast %173 : vector<2x8x1xf32> to vector<2x8x16xf32>
    %175 = arith.subf %171, %174 : vector<2x8x16xf32>
    %176 = math.exp %175 : vector<2x8x16xf32>
    %cst_45 = arith.constant dense<0.000000e+00> : vector<2x8xf32>
    %177 = vector.multi_reduction <add>, %176, %cst_45 [2] : vector<2x8x16xf32> to vector<2x8xf32>
    %178 = vector.shape_cast %177 : vector<2x8xf32> to vector<2x8x1xf32>
    %179 = tpu.reciprocal %178 {approx = true} : vector<2x8x1xf32> -> vector<2x8x1xf32>
    %180 = vector.broadcast %179 : vector<2x8x1xf32> to vector<2x8x16xf32>
    %181 = arith.mulf %176, %180 : vector<2x8x16xf32>
    %182 = arith.truncf %181 : vector<2x8x16xf32> to vector<2x8x16xbf16>
    "tpu.trace_start"() <{level = 10 : i32, message = "bts,bsd->btd"}> : () -> ()
    %cst_46 = arith.constant dense<0.000000e+00> : vector<2x8x8xf32>
    %183 = tpu.matmul %182, %140, %cst_46 {dimension_numbers = #tpu.dot_dimension_numbers<[2], [1], [1], [2], [0, 0, 0, 1, 1, 2], [0], [0]>} : vector<2x8x16xbf16>, vector<2x16x8xbf16>, vector<2x8x8xf32> -> vector<2x8x8xf32>
    "tpu.trace_stop"() : () -> ()
    %184 = vector.extract_strided_slice %5 {offsets = [0, 24], sizes = [16, 8], strides = [1, 1]} : vector<16x32xf32> to vector<16x8xf32>
    %185 = vector.extract_strided_slice %19 {offsets = [0, 0, 24], sizes = [2, 16, 8], strides = [1, 1, 1]} : vector<2x16x32xbf16> to vector<2x16x8xbf16>
    %186 = vector.extract_strided_slice %21 {offsets = [0, 0, 24], sizes = [2, 16, 8], strides = [1, 1, 1]} : vector<2x16x32xbf16> to vector<2x16x8xbf16>
    %187 = vector.extract_strided_slice %22 {offsets = [0, 24], sizes = [1, 8], strides = [1, 1]} : vector<1x32xf32> to vector<1x8xf32>
    %188 = vector.broadcast %187 : vector<1x8xf32> to vector<16x8xf32>
    %189 = arith.addf %184, %188 : vector<16x8xf32>
    %190 = vector.shape_cast %189 : vector<16x8xf32> to vector<2x8x8xf32>
    %191 = arith.truncf %190 : vector<2x8x8xf32> to vector<2x8x8xbf16>
    %192 = vector.extract_strided_slice %23 {offsets = [0, 24], sizes = [1, 8], strides = [1, 1]} : vector<1x32xf32> to vector<1x8xf32>
    %193 = vector.broadcast %192 : vector<1x8xf32> to vector<16x8xf32>
    %194 = arith.addf %184, %193 : vector<16x8xf32>
    %195 = arith.truncf %194 : vector<16x8xf32> to vector<16x8xbf16>
    "tpu.trace_start"() <{level = 10 : i32, message = "btd,bsd->bts"}> : () -> ()
    %cst_47 = arith.constant dense<0.000000e+00> : vector<2x8x16xf32>
    %196 = tpu.matmul %191, %185, %cst_47 {dimension_numbers = #tpu.dot_dimension_numbers<[2], [2], [1], [1], [0, 0, 0, 1, 1, 1], [0], [0]>} : vector<2x8x8xbf16>, vector<2x16x8xbf16>, vector<2x8x16xf32> -> vector<2x8x16xf32>
    "tpu.trace_stop"() : () -> ()
    %197 = vector.extract_strided_slice %24 {offsets = [0, 24], sizes = [23, 8], strides = [1, 1]} : vector<23x32xbf16> to vector<23x8xbf16>
    %cst_48 = arith.constant dense<0.000000e+00> : vector<16x23xf32>
    %198 = tpu.matmul %195, %197, %cst_48 {dimension_numbers = #tpu.dot_dimension_numbers<[1], [1], [0], [0], [0, 0, 1, 0], [], []>} : vector<16x8xbf16>, vector<23x8xbf16>, vector<16x23xf32> -> vector<16x23xf32>
    %199 = vector.shape_cast %198 : vector<16x23xf32> to vector<2x8x23xf32>
    %200 = vector.extract_strided_slice %199 {offsets = [0, 0, 1], sizes = [2, 8, 22], strides = [1, 1, 1]} : vector<2x8x23xf32> to vector<2x8x22xf32>
    %201 = vector.extract_strided_slice %199 {offsets = [0, 0, 0], sizes = [2, 8, 22], strides = [1, 1, 1]} : vector<2x8x23xf32> to vector<2x8x22xf32>
    %202 = vector.shape_cast %31 : vector<1x8x22xi1> to vector<1x8x22xi1>
    %203 = vector.broadcast %202 : vector<1x8x22xi1> to vector<2x8x22xi1>
    %204 = arith.select %203, %200, %201 : vector<2x8x22xi1>, vector<2x8x22xf32>
    %205 = vector.extract_strided_slice %204 {offsets = [0, 0, 2], sizes = [2, 8, 20], strides = [1, 1, 1]} : vector<2x8x22xf32> to vector<2x8x20xf32>
    %206 = vector.extract_strided_slice %204 {offsets = [0, 0, 0], sizes = [2, 8, 20], strides = [1, 1, 1]} : vector<2x8x22xf32> to vector<2x8x20xf32>
    %207 = vector.shape_cast %38 : vector<1x8x20xi1> to vector<1x8x20xi1>
    %208 = vector.broadcast %207 : vector<1x8x20xi1> to vector<2x8x20xi1>
    %209 = arith.select %208, %205, %206 : vector<2x8x20xi1>, vector<2x8x20xf32>
    %210 = vector.extract_strided_slice %209 {offsets = [0, 0, 4], sizes = [2, 8, 16], strides = [1, 1, 1]} : vector<2x8x20xf32> to vector<2x8x16xf32>
    %211 = vector.extract_strided_slice %209 {offsets = [0, 0, 0], sizes = [2, 8, 16], strides = [1, 1, 1]} : vector<2x8x20xf32> to vector<2x8x16xf32>
    %212 = vector.shape_cast %45 : vector<1x8x16xi1> to vector<1x8x16xi1>
    %213 = vector.broadcast %212 : vector<1x8x16xi1> to vector<2x8x16xi1>
    %214 = arith.select %213, %210, %211 : vector<2x8x16xi1>, vector<2x8x16xf32>
    %215 = arith.addf %196, %214 : vector<2x8x16xf32>
    %cst_49 = arith.constant 0.353553385 : f32
    %216 = vector.broadcast %cst_49 : f32 to vector<2x8x16xf32>
    %217 = arith.mulf %215, %216 : vector<2x8x16xf32>
    %cst_50 = arith.constant dense<0xFF800000> : vector<2x8xf32>
    %218 = vector.multi_reduction <maximumf>, %217, %cst_50 [2] : vector<2x8x16xf32> to vector<2x8xf32>
    %219 = vector.shape_cast %218 : vector<2x8xf32> to vector<2x8x1xf32>
    %220 = vector.broadcast %219 : vector<2x8x1xf32> to vector<2x8x16xf32>
    %221 = arith.subf %217, %220 : vector<2x8x16xf32>
    %222 = math.exp %221 : vector<2x8x16xf32>
    %cst_51 = arith.constant dense<0.000000e+00> : vector<2x8xf32>
    %223 = vector.multi_reduction <add>, %222, %cst_51 [2] : vector<2x8x16xf32> to vector<2x8xf32>
    %224 = vector.shape_cast %223 : vector<2x8xf32> to vector<2x8x1xf32>
    %225 = tpu.reciprocal %224 {approx = true} : vector<2x8x1xf32> -> vector<2x8x1xf32>
    %226 = vector.broadcast %225 : vector<2x8x1xf32> to vector<2x8x16xf32>
    %227 = arith.mulf %222, %226 : vector<2x8x16xf32>
    %228 = arith.truncf %227 : vector<2x8x16xf32> to vector<2x8x16xbf16>
    "tpu.trace_start"() <{level = 10 : i32, message = "bts,bsd->btd"}> : () -> ()
    %cst_52 = arith.constant dense<0.000000e+00> : vector<2x8x8xf32>
    %229 = tpu.matmul %228, %186, %cst_52 {dimension_numbers = #tpu.dot_dimension_numbers<[2], [1], [1], [2], [0, 0, 0, 1, 1, 2], [0], [0]>} : vector<2x8x16xbf16>, vector<2x16x8xbf16>, vector<2x8x8xf32> -> vector<2x8x8xf32>
    "tpu.trace_stop"() : () -> ()
    %230 = tpu.concatenate %91, %137, %183, %229 in 2 : vector<2x8x8xf32>, vector<2x8x8xf32>, vector<2x8x8xf32>, vector<2x8x8xf32> -> vector<2x8x32xf32>
    %231 = vector.shape_cast %230 : vector<2x8x32xf32> to vector<16x32xf32>
    %232 = arith.truncf %231 : vector<16x32xf32> to vector<16x32xbf16>
    %c0_53 = arith.constant 0 : index
    %c0_54 = arith.constant 0 : index
    %233 = vector.load %arg13[%c0_53, %c0_54] : memref<32x32xbf16, #tpu.memory_space<vmem>>, vector<32x32xbf16>
    %cst_55 = arith.constant dense<0.000000e+00> : vector<16x32xf32>
    %234 = tpu.matmul %232, %233, %cst_55 {dimension_numbers = #tpu.dot_dimension_numbers<[1], [0], [0], [1], [0, 0, 1, 1], [], []>} : vector<16x32xbf16>, vector<32x32xbf16>, vector<16x32xf32> -> vector<16x32xf32>
    %c0_56 = arith.constant 0 : index
    %c0_57 = arith.constant 0 : index
    %235 = vector.load %arg14[%c0_56, %c0_57] : memref<1x32xf32, #tpu.memory_space<vmem>>, vector<1x32xf32>
    %236 = vector.broadcast %235 : vector<1x32xf32> to vector<16x32xf32>
    %237 = arith.addf %234, %236 : vector<16x32xf32>
    %c0_58 = arith.constant 0 : index
    %c0_59 = arith.constant 0 : index
    %238 = vector.load %arg15[%c0_58, %c0_59] : memref<16x32xf32, #tpu.memory_space<vmem>>, vector<16x32xf32>
    tpu.vector_store %arg15[%c0_58, %c0_59], %237 {strides = array<i32>} : memref<16x32xf32, #tpu.memory_space<vmem>>, vector<16x32xf32>,
    return
  }
  func.func @transform_0(%arg0: i32) -> (i32, i32) {
    %c0_i32 = arith.constant 0 : i32
    %c0_i32_0 = arith.constant 0 : i32
    return %arg0, %c0_i32 : i32, i32
  }
  func.func @transform_1(%arg0: i32) -> (i32, i32) {
    %c0_i32 = arith.constant 0 : i32
    %c0_i32_0 = arith.constant 0 : i32
    return %arg0, %c0_i32 : i32, i32
  }
  func.func @transform_2(%arg0: i32) -> (i32, i32) {
    %c0_i32 = arith.constant 0 : i32
    %c0_i32_0 = arith.constant 0 : i32
    return %arg0, %c0_i32 : i32, i32
  }
  func.func @transform_3(%arg0: i32) -> (i32, i32) {
    %c0_i32 = arith.constant 0 : i32
    %c0_i32_0 = arith.constant 0 : i32
    %c0_i32_1 = arith.constant 0 : i32
    return %c0_i32, %c0_i32_0 : i32, i32
  }
  func.func @transform_4(%arg0: i32) -> (i32, i32) {
    %c0_i32 = arith.constant 0 : i32
    %c0_i32_0 = arith.constant 0 : i32
    %c0_i32_1 = arith.constant 0 : i32
    return %c0_i32, %c0_i32_0 : i32, i32
  }
  func.func @transform_5(%arg0: i32) -> (i32, i32) {
    %c0_i32 = arith.constant 0 : i32
    %c0_i32_0 = arith.constant 0 : i32
    %c0_i32_1 = arith.constant 0 : i32
    return %c0_i32, %c0_i32_0 : i32, i32
  }
  func.func @transform_6(%arg0: i32) -> (i32, i32) {
    %c0_i32 = arith.constant 0 : i32
    %c0_i32_0 = arith.constant 0 : i32
    %c0_i32_1 = arith.constant 0 : i32
    return %c0_i32, %c0_i32_0 : i32, i32
  }
  func.func @transform_7(%arg0: i32) -> (i32, i32) {
    %c0_i32 = arith.constant 0 : i32
    %c0_i32_0 = arith.constant 0 : i32
    %c0_i32_1 = arith.constant 0 : i32
    return %c0_i32, %c0_i32_0 : i32, i32
  }
  func.func @transform_8(%arg0: i32) -> (i32, i32) {
    %c0_i32 = arith.constant 0 : i32
    %c0_i32_0 = arith.constant 0 : i32
    %c0_i32_1 = arith.constant 0 : i32
    return %c0_i32, %c0_i32_0 : i32, i32
  }
  func.func @transform_9(%arg0: i32) -> (i32, i32) {
    %c0_i32 = arith.constant 0 : i32
    %c0_i32_0 = arith.constant 0 : i32
    %c0_i32_1 = arith.constant 0 : i32
    return %c0_i32, %c0_i32_0 : i32, i32
  }
  func.func @transform_10(%arg0: i32) -> (i32, i32) {
    %c0_i32 = arith.constant 0 : i32
    %c0_i32_0 = arith.constant 0 : i32
    %c0_i32_1 = arith.constant 0 : i32
    return %c0_i32, %c0_i32_0 : i32, i32
  }
  func.func @transform_11(%arg0: i32) -> (i32, i32) {
    %c0_i32 = arith.constant 0 : i32
    %c0_i32_0 = arith.constant 0 : i32
    %c0_i32_1 = arith.constant 0 : i32
    return %c0_i32, %c0_i32_0 : i32, i32
  }
  func.func @transform_12(%arg0: i32) -> (i32, i32) {
    %c0_i32 = arith.constant 0 : i32
    %c0_i32_0 = arith.constant 0 : i32
    %c0_i32_1 = arith.constant 0 : i32
    return %c0_i32, %c0_i32_0 : i32, i32
  }
  func.func @transform_13(%arg0: i32) -> (i32, i32) {
    %c0_i32 = arith.constant 0 : i32
    %c0_i32_0 = arith.constant 0 : i32
    %c0_i32_1 = arith.constant 0 : i32
    return %c0_i32, %c0_i32_0 : i32, i32
  }
  func.func @transform_14(%arg0: i32) -> (i32, i32) {
    %c0_i32 = arith.constant 0 : i32
    %c0_i32_0 = arith.constant 0 : i32
    return %arg0, %c0_i32 : i32, i32
  }
}

</mosaic_0001>

<bundles_post_ra>
// kernel: tpu_custom_call.1
= control target key start
LH: loop header
LB: loop body
LE: loop exit
PB: predicated region body
PF: predicated region fallthrough
CT: control target
= control target key end

     0   :  { %s3406_s0 = inlined_call_operand.vmem [shape: bf16[32,32], index: 0, kind: input, shape index: {}]   ;;  %s3407_s1 = inlined_call_operand.vmem [shape: bf16[64,32], index: 1, kind: input, shape index: {}]   ;;  %s3408_s2 = inlined_call_operand.vmem [shape: bf16[64,32], index: 2, kind: input, shape index: {}]   ;;  %s3409_s3 = inlined_call_operand.hbm [shape: bf16[23,32], index: 3, kind: input, shape index: {}]   ;;  %s3410_s4 = inlined_call_operand.vmem [shape: bf16[32,32], index: 4, kind: input, shape index: {}]   ;;  %s3411_s5 = inlined_call_operand.vmem [shape: bf16[32,32], index: 5, kind: input, shape index: {}]   ;;  %s3412_s6 = inlined_call_operand.vmem [shape: bf16[32,32], index: 6, kind: input, shape index: {}]   ;;  %s3413_s7 = inlined_call_operand.vmem [shape: f32[1,32], index: 7, kind: input, shape index: {}]   ;;  %s3414_s8 = inlined_call_operand.vmem [shape: f32[1,32], index: 8, kind: input, shape index: {}]   ;;  %s3415_s9 = inlined_call_operand.vmem [shape: f32[1,32], index: 9, kind: input, shape index: {}]   ;;  %s3416_s10 = inlined_call_operand.vmem [shape: f32[1,32], index: 10, kind: input, shape index: {}]   ;;  %s3417_s11 = inlined_call_operand.vmem [shape: f32[1,32], index: 11, kind: input, shape index: {}]   ;;  %s3418_s12 = inlined_call_operand.vmem [shape: bf16[32,32], index: 12, kind: input, shape index: {}]   ;;  %s3419_s13 = inlined_call_operand.vmem [shape: f32[1,32], index: 13, kind: input, shape index: {}]   ;;  %s3420_s14 = inlined_call_operand.hbm [shape: f32[32,32], index: 14, kind: output, shape index: {}]  }
   0x1   :  { %3430 = sst [smem:[#allocation14_spill]] %s3409_s3 }
   0x2   :  { %19 = vsyncpa [#allocation3], 0 }
   0x3   :  { %20 = vsyncpa [#allocation4], 0 }
   0x4   :  { %22 = vsyncpa [#allocation4 + $0x1], 0  ;;  %s2888_s29 = smov 0   ;;  %s2890_s30 = smov 0  }
   0x5   :  { %s2892_s15 = smov 0   ;;  %s2894_s16 = smov 0  }
   0x6 LB: > { %3431 = sst [smem:[#allocation8_spill]] %s2782_s29  ;;  %s2909_s17 = sadd.s32 4294967295, %s2794_s16   ;;  %s2794_s16 = sphi %s2894_s16, %s3456_s16   ;;  %s2790_s15 = sphi %s2892_s15, %s3458_s15   ;;  %s2786_s30 = sphi %s2890_s30, %s3460_s30   ;;  %s2782_s29 = sphi %s2888_s29, %s3459_s29  }
   0x7   : > { %3432 = sst [smem:[#allocation9_spill]] %s2790_s15  ;;  %s2289_s18 = sadd.s32 4294967294, %s2794_s16  }
   0x8   : > { %3433 = sst [smem:[#allocation10_spill]] %s2794_s16  ;;  %s2913_s19 = sadd.s32 1, %s2794_s16  }
   0x9   : > { %3434 = sst [smem:[#allocation11_spill]] %s2913_s19  ;;  %s344_s20 = sadd.s32 1, %s2790_s15 }
   0xa   : > { %s341_s21 = ssub.s32 %s2794_s16, %s2913_s19  ;;  %p354_p0 = scmp.ne.s32.totalorder %s2790_s15, %s2786_s30 }
   0xb   : > { %p342_p1 = scmp.eq.s32.totalorder %s341_s21, 0  ;;  %p355_p2 = scmp.eq.s32.totalorder %s2909_s17, 1 }
   0xc   : > { %p360_p3 = scmp.ne.s32.totalorder %s2786_s30, %s2782_s29  ;;  %p361_p4 = scmp.eq.s32.totalorder %s2289_s18, 1 }
   0xd   : > { %s2924_s22 = scalar_select %p342_p1, %s2790_s15, %s344_s20  }
   0xe   : > { %p2926_p5 = por %p355_p2, %p354_p0  ;;  %p2930_p6 = por %p361_p4, %p360_p3 }
   0xf   : > { %3435 = sst [smem:[#allocation12_spill]] %s2924_s22  ;;  %p2290_p7 = scmp.ge.s32.totalorder %s2794_s16, 1 }
  0x10   : > { %s3436_s23 = scalar_select %p2926_p5, 1, 0 }
  0x11   : > { %s3437_s24 = scalar_select %p2930_p6, 1, 0 }
  0x12   : > { %p368_p8 = scmp.lt.s32.totalorder %s2794_s16, 3  ;;  %p3425_p9 = scmp.eq.s32.totalorder %s2909_s17, 0 }
  0x13   : > { %3438 = sst [smem:[#allocation13_spill]] %s3437_s24  ;;  %s2796_s26 = smov [#allocation2]  }
  0x14   : > { %p2937_p10 = pnand %p2290_p7, %p368_p8  ;;  %s380_s27 = sshll.u32 %s2796_s26, 4  ;;  %s381_s27 = int_to_ptr.vmem [resolvable:$true] %s380_s27 }
  0x15   : > { %s3441_s3 = sld [smem:[#allocation14_spill]] }
  0x16   : > { %s3439_s25 = scalar_select %p2937_p10, 1, 0 }
  0x17   : > { %p2579_p11 = pneg %p2937_p10 }
  0x19   : > { %p2945_p12 = pnand %p3425_p9, %p2579_p11 }
  0x1b   : > { %s2700_s21 = scalar_lea.hbm %s3441_s3, 192  ;;  %p2702_p0 = pneg %p2945_p12 }
  0x1c   : > { %p2701_p13 = scmp.ne.s32.totalorder %s3441_s3, %s2700_s21  ;;  %p2707_p3 = scmp.lt.u32.totalorder %s2700_s21, %s3441_s3 }
  0x1e   : > { %p2703_p1 = pnand %p2702_p0, %p2701_p13 }
  0x20   : > { %p2704_p2 = pneg %p2703_p1 }
  0x22   : > { %p2709_p4 = pnand %p2707_p3, %p2704_p2 }
  0x24   : > { %2712 = shalt.err (!%p2709_p4)
}
  0x25   : > { %s2713_s24 = scalar_lea.vmem %s381_s27, 192  ;;  %p2721_p9 = scmp.lt.s32.totalorder %s381_s27, %s381_s27 }
  0x26   : > { %p2714_p7 = scmp.ne.s32.totalorder %s381_s27, %s2713_s24  ;;  %p2722_p6 = scmp.lt.s32.totalorder %s2713_s24, %s2713_s24 }
  0x28   : > { %p2716_p8 = pnand %p2714_p7, %p2702_p0  ;;  %p2723_p5 = por %p2722_p6, %p2721_p9 }
  0x2a   : > { %p2717_p11 = pneg %p2716_p8 }
  0x2c   : > { %p2724_p10 = pnand %p2723_p5, %p2717_p11 }
  0x2e   : > { %2727 = shalt.err (!%p2724_p10)
}
  0x2f   : > { %s2797_s15 = smov 64   ;;  %s2798_s22 = smov 4  }
  0x30   : > { %2582 = dma.hbm_to_vmem [thread:$0]  (!%p2945_p12), %s3441_s3, 192, %s381_s27, [#allocation3], %s2797_s15, %s2797_s15, %s2798_s22  }
  0x31   : > { %p3442_p13 = scmp.ne.s32.totalorder %s3439_s25, 0 }
  0x32   : > { %p3443_p1 = scmp.eq.s32.totalorder (!%p3442_p13), %s2909_s17, 0 }
  0x33   : > { %453 = sbr.rel (%p3442_p13) target bundleno = 4966 (0x1366), region = 76 }
  0x3a   : > { %2773 = dma.done.wait (%p3443_p1), [#allocation3], 192   ;;  %p3444_p0 = pmov %p3443_p1 }
  0x3b   : > { %s2296_s19 = sshll.u32 %s2909_s17, 1  ;;  %v2799_v0 = vmov 0.0   ;;  %vm2800_vm0 = vmmov 0   ;;  %s2298_s24 = sshll.u32 %s2909_s17, 2  ;;  %v2653_v1 = vld [vmem:[%s3410_s4] sm:$0xff]   ;;  %v2655_v3 = vld [vmem:[%s3410_s4 + $0x8] sm:$0xff]  }
  0x3c   : > { %2775 = vsyncadd (%p3444_p0), [#allocation3], 4294967104  ;;  %2413 = vmatprep.subr.bf16.mxu0 %v2799_v0  ;;  %2417 = vmatprep.mubr.msk.bf16.mxu0 %vm2800_vm0, %v2799_v0  ;;  %p510_p5 = scmp.lt.s32.totalorder %s2296_s19, 3  ;;  %p516_p6 = scmp.lt.s32.totalorder %s2298_s24, 7  ;;  %v2654_v2 = vld [vmem:[%s3411_s5] sm:$0xff]   ;;  %v2656_v4 = vld [vmem:[%s3411_s5 + $0x8] sm:$0xff]  }
  0x3d   : > { %2414 = vmatpush3.bf16.msra.mxu0 %v2653_v1  ;;  %2421 = vmatprep.subr.bf16.mxu1 %v2654_v2  ;;  %vm559_vm1 = vcmask 261120   ;;  %v2661_v8 = vld [vmem:[%s3412_s6] sm:$0xff]   ;;  %vm833_vm2 = vcmask 64512   ;;  %v2662_v11 = vld [vmem:[%s3412_s6 + $0x8] sm:$0xff]   ;;  %s2801_s29 = smov 1   ;;  %s2802_s16 = smov 2  }
  0x3e   : > { %s3462_s19 = smov (!%p510_p5, %s2296_s19), 3  ;;  %s3464_s24 = smov (!%p516_p6, %s2298_s24), 7  ;;  %2415 = vmatprep.subr.bf16.mxu0 %v2799_v0  ;;  %2422 = vmatpush3.bf16.msra.mxu1 %v2654_v2  ;;  %v3004_v9 = vld [vmem:[#allocation2] sm:$0xff]   ;;  %v3015_v12 = vld [vmem:[#allocation2 + $0x8] ss:$0 sps:$4 sm:$0xff]   ;;  %vm1022_vm6 = vcmask 130048  }
  0x3f   : > { %s2297_s25 = sshll.u32 %s3462_s19, 2  ;;  %s2299_s27 = sshll.u32 %s3464_s24, 2  ;;  %2423 = vmatprep.subr.bf16.mxu1 %v2656_v4  ;;  %v838_v10 = vsel %vm833_vm2, %v3004_v9, 0  ;;  %v841_v13 = vsel %vm833_vm2, %v3015_v12, 0  ;;  %v2302_v16 = vld [vmem:[%s3413_s7] ss:$0 sm:$0xff] }
  0x40   : > { %s513_s20 = scalar_lea.vmem %s3406_s0, %s2297_s25  ;;  %s519_s24 = scalar_lea.vmem %s3407_s1, %s2299_s27  ;;  %v2307_v20 = vld [vmem:[%s3414_s8] ss:$0 sm:$0xff]  ;;  %vm2104_vm7 = vcmask 195584  }
  0x41   : > { %v2657_v5 = vld [vmem:[%s513_s20] sm:$0xff]   ;;  %s525_s3 = scalar_lea.vmem %s3408_s2, %s2299_s27  ;;  %2416 = vmatpush3.bf16.msra.mxu0 %v2655_v3  ;;  %v2659_v7 = vld [vmem:[%s519_s24 + $0x8] sm:$0xff]   ;;  %s2803_s27 = smov 4  }
  0x42   : > { %v2658_v6 = vld [vmem:[%s519_s24] sm:$0xff]   ;;  %2424 = vmatpush3.bf16.msra.mxu1 %v2656_v4  ;;  %2429 = vmatprep.subr.bf16.mxu0 %v2661_v8  ;;  %v2665_v15 = vld [vmem:[%s525_s3 + $0x8] sm:$0xff]   ;;  %s2804_s15 = smov 121   ;;  %s2805_s22 = smov 120  }
  0x43   : > { %2425 = vmatprep.mubr.msk.bf16.mxu1 %vm559_vm1, %v2658_v6  ;;  %2437 = vmatprep.subr.bf16.mxu1 %v2799_v0  ;;  %v2664_v14 = vld [vmem:[%s525_s3] sm:$0xff]   ;;  %s2806_s18 = smov 112   ;;  %s2807_s20 = smov 104  }
  0x44   : > { %2418 = vmatmul.mubr.msk.bf16.vlgmr.msra.gmra.mrb[0].mxu0 %vm559_vm1, %v2657_v5  ;;  %v2322_v21 = vld [vmem:[%s3417_s11] ss:$0 sm:$0xff]  ;;  %v797_v5 = vlaneseq  ;;  %s2808_s19 = smov 8   ;;  %s2809_s24 = smov 16  }
  0x45   : > { %2426 = vmatmul.mubr.msk.bf16.vlgmr.msra.gmra.mrb[0].mxu1 %vm559_vm1, %v2659_v7  ;;  %2430 = vmatpush3.bf16.msra.mxu0 %v2661_v8  ;;  %v2321_v38 = vld [vmem:[%s3416_s10] ss:$0 sm:$0xff]  ;;  %s2810_s3 = smov 24   ;;  %p3451_p10 = scmp.ne.s32.totalorder %s3436_s23, 0 }
  0x46   : > { %2441 = vmatprep.mubr.msk.bf16.mxu1 %vm2800_vm0, %v2799_v0  ;;  %2431 = vmatprep.subr.bf16.mxu0 %v2662_v11  ;;  %v2314_v46 = vld [vmem:[%s3415_s9] ss:$0 sm:$0xff]  ;;  %v798_v6 = vshrl.u32 %v797_v5, 7  ;;  %s2811_s26 = smov [#allocation5]  }
  0x47   : > { %2433 = vmatprep.mubr.msk.bf16.mxu0 %vm559_vm1, %v2664_v14 }
  0x48   : > { %v799_v7 = vsub.s32 7, %v798_v6 }
  0x49   : > { %2432 = vmatpush3.bf16.msra.mxu0 %v2662_v11 }
  0x4a   : > { %2445 = vmatprep.subr.bf16.mxu0 %v2799_v0  ;;  %v800_v8 = vand.u32 1, %v799_v7  ;;  %v802_v14 = vand.u32 2, %v799_v7 }
  0x4b   : > { %2438 = vmatpush3.bf16.xpose.msra.mxu1 %v838_v10 }
  0x4c   : > { %2439 = vmatprep.subr.bf16.mxu1 %v2799_v0  ;;  %2434 = vmatmul.mubr.msk.bf16.vlgmr.msra.gmra.mrb[4].mxu0 %vm559_vm1, %v2665_v15  ;;  %vm3079_vm3 = vcmp.ne.s32.totalorder %v800_v8, 0  ;;  %vm3086_vm4 = vcmp.ne.s32.totalorder %v802_v14, 0 }
  0x4d   : > { %2447 = vmatprep.mubr.msk.bf16.mxu0 %vm2800_vm0, %v2799_v0 }
  0x53   : > { %2440 = vmatpush3.bf16.xpose.msra.mxu1 %v841_v13 }
  0x54   : > { %2457 = vmatprep.subr.bf16.mxu1 %v2799_v0 }
 0x117   : > { %v597_v17 = vpop.f32.mrb[0].mxu0 }
 0x118   : > { %v598_v18 = vadd.f32 %v2302_v16, %v597_v17  ;;  %v2419_v19 = vpop.f32.mrb[1].mxu0  ;;  %v2427_v22 = vpop.f32.mrb[0].mxu1 }
 0x119   : > { %v600_v23 = vpop.f32.mrb[2].mxu0  ;;  %v690_v24 = vadd.f32 %v2427_v22, %v2307_v20  ;;  %v681_v26 = vpop.f32.mrb[1].mxu1 }
 0x11a   : > { %v601_v25 = vadd.f32 %v2302_v16, %v600_v23  ;;  %v2420_v27 = vpop.f32.mrb[3].mxu0  ;;  %v682_v28 = vadd.f32 %v2307_v20, %v681_v26  ;;  %v2428_v29 = vpop.f32.mrb[2].mxu1  ;;  %v822_v30 = vadd.f32 %v2322_v21, %v598_v18  ;;  %v812_v40 = vadd.f32 %v2321_v38, %v598_v18 }
 0x11b   : > { %v693_v32 = vadd.f32 %v2428_v29, %v2307_v20  ;;  %v684_v33 = vpop.f32.mrb[3].mxu1  ;;  %v804_v18 = vand.u32 4, %v799_v7 }
 0x11c   : > { %v823_v31 = vadd.f32 %v2322_v21, %v601_v25  ;;  %v685_v34 = vadd.f32 %v2307_v20, %v684_v33  ;;  %v3050_v41 = vpack.c.bf16 %v812_v40, %v812_v40  ;;  %v813_v43 = vadd.f32 %v2321_v38, %v601_v25 }
 0x11d   : > { %v3036_v36 = vpack.c.bf16 %v693_v32, %v690_v24  ;;  %vm3093_vm5 = vcmp.ne.s32.totalorder %v804_v18, 0 }
 0x11e   : > { %v3034_v35 = vpack.c.bf16 %v823_v31, %v822_v30  ;;  %v3038_v37 = vpack.c.bf16 %v685_v34, %v682_v28  ;;  %v3059_v44 = vpack.c.bf16 %v813_v43, %v813_v43 }
 0x11f   : > { %v978_v42 = vsel %vm833_vm2, %v3036_v36, 0  ;;  %v2435_v45 = vpop.f32.mrb[4].mxu0 }
 0x120   : > { %2442 = vmatmul.mubr.msk.bf16.vlgmr.msra.gmra.mrb[4].mxu1 %vm833_vm2, %v3034_v35  ;;  %v928_v39 = vsel %vm833_vm2, %v3038_v37, 0  ;;  %v782_v47 = vadd.f32 %v2435_v45, %v2314_v46  ;;  %v773_v48 = vpop.f32.mrb[5].mxu0 }
 0x121   : > { %2459 = vmatprep.mubr.msk.bf16.mxu1 %vm2800_vm0, %v2799_v0  ;;  %2446 = vmatpush3.bf16.xpose.msra.mxu0 %v928_v39  ;;  %v774_v49 = vadd.f32 %v2314_v46, %v773_v48  ;;  %v2436_v50 = vpop.f32.mrb[6].mxu0 }
 0x122   : > { %2451 = vmatprep.subr.bf16.mxu0 %v2799_v0  ;;  %v785_v51 = vadd.f32 %v2436_v50, %v2314_v46  ;;  %v776_v52 = vpop.f32.mrb[7].mxu0 }
 0x123   : > { %v777_v53 = vadd.f32 %v2314_v46, %v776_v52 }
 0x124   : > { %v3068_v54 = vpack.c.bf16 %v785_v51, %v782_v47 }
 0x125   : > { %v3070_v55 = vpack.c.bf16 %v777_v53, %v774_v49 }
 0x127   : > { %2458 = vmatpush3.bf16.msra.mxu1 %v3070_v55 }
 0x128   : > { %2448 = vmatmul.mubr.msk.bf16.vlgmr.msra.gmra.mrb[8].mxu0 %vm833_vm2, %v3050_v41  ;;  %2469 = vmatprep.subr.bf16.mxu1 %v2799_v0 }
 0x129   : > { %2452 = vmatpush3.bf16.xpose.msra.mxu0 %v978_v42  ;;  %2453 = vmatprep.mubr.msk.bf16.mxu0 %vm2800_vm0, %v2799_v0 }
 0x12a   : > { %2463 = vmatprep.subr.bf16.mxu0 %v2799_v0 }
 0x130   : > { %2454 = vmatmul.mubr.msk.bf16.vlgmr.msra.gmra.mrb[12].mxu0 %vm833_vm2, %v3059_v44 }
 0x131   : > { %2465 = vmatprep.mubr.msk.bf16.mxu0 %vm2800_vm0, %v2799_v0  ;;  %2464 = vmatpush3.bf16.msra.mxu0 %v3068_v54 }
 0x132   : > { %2477 = vmatprep.subr.bf16.mxu0 %v2799_v0 }
 0x1f3   : > { %v877_v56 = vpop.f32.mrb[4].mxu1 }
 0x1f4   : > { %888 = vrot.lane.b32.xlu0 %v877_v56, %s2801_s29  ;;  %v2443_v57 = vpop.f32.mrb[5].mxu1 }
 0x1f5   : > { %v880_v58 = vpop.f32.mrb[6].mxu1 }
 0x1f6   : > { %v2444_v59 = vpop.f32.mrb[7].mxu1 }
 0x1fb   : > { %v964_v60 = vpop.f32.mrb[8].mxu0 }
 0x1fc   : > { %v2449_v61 = vpop.f32.mrb[9].mxu0 }
 0x1fd   : > { %v967_v62 = vpop.f32.mrb[10].mxu0 }
 0x1fe   : > { %v2450_v63 = vpop.f32.mrb[11].mxu0 }
 0x203   : > { %v3077_v1 = vpop.f32.mrb[12].mxu0 }
 0x204   : > { %v2455_v2 = vpop.f32.mrb[13].mxu0 }
 0x205   : > { %v1017_v3 = vpop.f32.mrb[14].mxu0 }
 0x206   : > { %v2456_v4 = vpop.f32.mrb[15].mxu0 }
 0x266   : > { %v889_v11 = vpop.permute.xlu0 %888 }
 0x267   : > { %v894_v13 = vsel %vm3079_vm3, %v877_v56, %v889_v11 }
 0x268   : > { %900 = vrot.lane.b32.xlu0 %v894_v13, %s2802_s16 }
 0x2da   : > { %v901_v16 = vpop.permute.xlu0 %900 }
 0x2db   : > { %v906_v17 = vsel %vm3086_vm4, %v894_v13, %v901_v16 }
 0x2dc   : > { %912 = vrot.lane.b32.xlu1 %v906_v17, %s2803_s27 }
 0x34e   : > { %v913_v20 = vpop.permute.xlu1 %912 }
 0x34f   : > { %v918_v21 = vsel %vm3093_vm5, %v906_v17, %v913_v20 }
 0x350   : > { %921 = vrot.lane.b32.xlu1 %v918_v21, %s2804_s15 }
 0x354   : > { %890 = vrot.lane.b32.xlu1 %v880_v58, %s2801_s29 }
 0x3c2   : > { %v922_v22 = vpop.permute.xlu1 %921 }
 0x3c3   : > { %v965_v23 = vadd.f32 %v964_v60, %v922_v22 }
 0x3c5   : > { %v1020_v24 = vmul.f32 0.35355338, %v965_v23 }
 0x3c6   : > { %v891_v25 = vpop.permute.xlu1 %890 }
 0x3c7   : > { %v895_v26 = vsel %vm3079_vm3, %v880_v58, %v891_v25  ;;  %v1023_v27 = vsel %vm1022_vm6, %v1020_v24, -inf }
 0x3c8   : > { %902 = vrot.lane.b32.xlu1 %v895_v26, %s2802_s16  ;;  %1024 = vmax.xlane.f32.xlu0 %v1023_v27 }
 0x3de   : > { %1136 = vrot.lane.b32.xlu0 %v3004_v9, %s2805_s22 }
 0x3e2   : > { %1138 = vrot.lane.b32.xlu0 %v3015_v12, %s2805_s22 }
 0x3e6   : > { %1134 = vrot.lane.b32.xlu0 %v3034_v35, %s2805_s22 }
 0x43a   : > { %v903_v33 = vpop.permute.xlu1 %902 }
 0x43b   : > { %v907_v34 = vsel %vm3086_vm4, %v895_v26, %v903_v33 }
 0x455   : > { %v1025_v28 = vpop.xlane.xlu0 %1024 }
 0x456   : > { %v1029_v29 = vsub.f32 %v1020_v24, %v1025_v28 }
 0x458   : > { %v1031_v30 = vmul.f32 1.442695, %v1029_v29 }
 0x459   : > { %v1137_v45 = vpop.permute.xlu0 %1136 }
 0x45a   : > { %2668 = vpow2.f32 %v1031_v30  ;;  %v1144_v46 = vsel %vm833_vm2, %v1137_v45, 0 }
 0x45d   : > { %v1139_v48 = vpop.permute.xlu0 %1138 }
 0x45e   : > { %v1147_v49 = vsel %vm833_vm2, %v1139_v48, 0 }
 0x461   : > { %v1135_v50 = vpop.permute.xlu0 %1134 }
 0x464   : > { %v2669_v31 = vpop.eup %2668 }
 0x465   : > { %v1035_v32 = vsel %vm1022_vm6, %v2669_v31, 0.0 }
 0x466   : > { %1036 = vadd.xlane.f32.xlu1 %v1035_v32 }
 0x477   : > { %914 = vrot.lane.b32.xlu1 %v907_v34, %s2803_s27 }
 0x4f3   : > { %v1037_v38 = vpop.xlane.xlu1 %1036 }
 0x4f4   : > { %2670 = vrcp.f32 %v1037_v38 }
 0x4f7   : > { %v915_v39 = vpop.permute.xlu1 %914 }
 0x4f8   : > { %v919_v40 = vsel %vm3093_vm5, %v907_v34, %v915_v39 }
 0x4f9   : > { %971 = vrot.lane.b32.xlu0 %v919_v40, %s2804_s15 }
 0x4fe   : > { %v2671_v42 = vpop.eup %2670 }
 0x4ff   : > { %v1043_v43 = vmul.f32 %v2671_v42, %v2669_v31 }
 0x501   : > { %v1045_v47 = vpack.c.bf16 %v1043_v43, %v1043_v43 }
 0x503   : > { %2460 = vmatmul.mubr.msk.bf16.vlgmr.msra.gmra.mrb[8].mxu1 %vm1022_vm6, %v1045_v47 }
 0x504   : > { %2470 = vmatpush3.bf16.xpose.msra.mxu1 %v1144_v46  ;;  %2473 = vmatprep.mubr.msk.bf16.mxu1 %vm2800_vm0, %v2799_v0 }
 0x505   : > { %2471 = vmatprep.subr.bf16.mxu1 %v2799_v0 }
 0x50c   : > { %2472 = vmatpush3.bf16.xpose.msra.mxu1 %v1147_v49 }
 0x50d   : > { %2489 = vmatprep.subr.bf16.mxu1 %v2799_v0 }
 0x513   : > { %2474 = vmatmul.mubr.msk.bf16.vlgmr.msra.gmra.mrb[12].mxu1 %vm833_vm2, %v1135_v50 }
 0x514   : > { %2491 = vmatprep.mubr.msk.bf16.mxu1 %vm2800_vm0, %v2799_v0 }
 0x56b   : > { %v972_v51 = vpop.permute.xlu0 %971 }
 0x56c   : > { %v1015_v52 = vadd.f32 %v3077_v1, %v972_v51 }
 0x56e   : > { %v1021_v53 = vmul.f32 0.35355338, %v1015_v52 }
 0x570   : > { %v1026_v56 = vsel %vm1022_vm6, %v1021_v53, -inf }
 0x571   : > { %1027 = vmax.xlane.f32.xlu1 %v1026_v56 }
 0x582   : > { %1221 = vrot.lane.b32.xlu1 %v3050_v41, %s2805_s22 }
 0x5d6   : > { %v3132_v57 = vpop.f32.mrb[8].mxu1 }
 0x5d7   : > { %v2461_v58 = vpop.f32.mrb[9].mxu1 }
 0x5d8   : > { %v1087_v59 = vpop.f32.mrb[10].mxu1 }
 0x5d9   : > { %v2462_v60 = vpop.f32.mrb[11].mxu1 }
 0x5e6   : > { %v1183_v61 = vpop.f32.mrb[12].mxu1 }
 0x5e7   : > { %1192 = vrot.lane.b32.xlu1 %v1183_v61, %s2801_s29  ;;  %v2475_v62 = vpop.f32.mrb[13].mxu1 }
 0x5e8   : > { %v1186_v63 = vpop.f32.mrb[14].mxu1 }
 0x5e9   : > { %v2476_v2 = vpop.f32.mrb[15].mxu1 }
 0x5fe   : > { %v1028_v3 = vpop.xlane.xlu1 %1027 }
 0x5ff   : > { %v1030_v1 = vsub.f32 %v1021_v53, %v1028_v3 }
 0x601   : > { %v1033_v4 = vmul.f32 1.442695, %v1030_v1 }
 0x602   : > { %v1222_v7 = vpop.permute.xlu1 %1221 }
 0x603   : > { %2672 = vpow2.f32 %v1033_v4 }
 0x60d   : > { %v2673_v5 = vpop.eup %2672 }
 0x60e   : > { %v1038_v6 = vsel %vm1022_vm6, %v2673_v5, 0.0 }
 0x60f   : > { %1039 = vadd.xlane.f32.xlu0 %v1038_v6 }
 0x625   : > { %1224 = vrot.lane.b32.xlu0 %v3038_v37, %s2805_s22 }
 0x659   : > { %v1193_v8 = vpop.permute.xlu1 %1192 }
 0x65a   : > { %v1198_v11 = vsel %vm3079_vm3, %v1183_v61, %v1193_v8 }
 0x65b   : > { %1202 = vrot.lane.b32.xlu0 %v1198_v11, %s2802_s16 }
 0x69c   : > { %v1040_v13 = vpop.xlane.xlu0 %1039 }
 0x69d   : > { %2674 = vrcp.f32 %v1040_v13 }
 0x6a0   : > { %v1225_v17 = vpop.permute.xlu0 %1224 }
 0x6a1   : > { %v1234_v20 = vsel %vm833_vm2, %v1225_v17, 0 }
 0x6a7   : > { %v2675_v14 = vpop.eup %2674 }
 0x6a8   : > { %v1044_v16 = vmul.f32 %v2675_v14, %v2673_v5 }
 0x6aa   : > { %v1046_v18 = vpack.c.bf16 %v1044_v16, %v1044_v16 }
 0x6ac   : > { %2466 = vmatmul.mubr.msk.bf16.vlgmr.msra.gmra.mrb[16].mxu0 %vm1022_vm6, %v1046_v18 }
 0x6ad   : > { %2478 = vmatpush3.bf16.xpose.msra.mxu0 %v1234_v20  ;;  %2479 = vmatprep.mubr.msk.bf16.mxu0 %vm2800_vm0, %v2799_v0 }
 0x6ae   : > { %2483 = vmatprep.subr.bf16.mxu0 %v2799_v0 }
 0x6b4   : > { %2480 = vmatmul.mubr.msk.bf16.vlgmr.msra.gmra.mrb[20].mxu0 %vm833_vm2, %v1222_v7 }
 0x6b5   : > { %2485 = vmatprep.mubr.msk.bf16.mxu0 %vm2800_vm0, %v2799_v0 }
 0x6cd   : > { %v1203_v21 = vpop.permute.xlu0 %1202 }
 0x6ce   : > { %v1208_v22 = vsel %vm3086_vm4, %v1198_v11, %v1203_v21 }
 0x6cf   : > { %1212 = vrot.lane.b32.xlu1 %v1208_v22, %s2803_s27 }
 0x6d3   : > { %1280 = vrot.lane.b32.xlu1 %v3036_v36, %s2805_s22 }
 0x741   : > { %v1213_v23 = vpop.permute.xlu1 %1212 }
 0x742   : > { %v1218_v24 = vsel %vm3093_vm5, %v1208_v22, %v1213_v23 }
 0x743   : > { %1227 = vrot.lane.b32.xlu0 %v1218_v24, %s2804_s15 }
 0x745   : > { %v1281_v25 = vpop.permute.xlu1 %1280 }
 0x746   : > { %v1290_v26 = vsel %vm833_vm2, %v1281_v25, 0 }
 0x747   : > { %1277 = vrot.lane.b32.xlu0 %v3059_v44, %s2805_s22  ;;  %2484 = vmatpush3.bf16.xpose.msra.mxu0 %v1290_v26 }
 0x748   : > { %2495 = vmatprep.subr.bf16.mxu0 %v2799_v0 }
 0x74b   : > { %1194 = vrot.lane.b32.xlu0 %v1186_v63, %s2801_s29 }
 0x77f   : > { %v3162_v27 = vpop.f32.mrb[16].mxu0 }
 0x780   : > { %v2467_v28 = vpop.f32.mrb[17].mxu0 }
 0x781   : > { %v1130_v29 = vpop.f32.mrb[18].mxu0 }
 0x782   : > { %v2468_v30 = vpop.f32.mrb[19].mxu0 }
 0x787   : > { %v1270_v31 = vpop.f32.mrb[20].mxu0 }
 0x788   : > { %v2481_v32 = vpop.f32.mrb[21].mxu0 }
 0x789   : > { %v1273_v33 = vpop.f32.mrb[22].mxu0 }
 0x78a   : > { %v2482_v34 = vpop.f32.mrb[23].mxu0 }
 0x7b5   : > { %v1228_v38 = vpop.permute.xlu0 %1227 }
 0x7b6   : > { %v1271_v39 = vadd.f32 %v1270_v31, %v1228_v38 }
 0x7b8   : > { %v1332_v40 = vmul.f32 0.35355338, %v1271_v39 }
 0x7b9   : > { %v1278_v42 = vpop.permute.xlu0 %1277 }
 0x7ba   : > { %2486 = vmatmul.mubr.msk.bf16.vlgmr.msra.gmra.mrb[24].mxu0 %vm833_vm2, %v1278_v42  ;;  %v1334_v43 = vsel %vm1022_vm6, %v1332_v40, -inf }
 0x7bb   : > { %1335 = vmax.xlane.f32.xlu1 %v1334_v43  ;;  %2497 = vmatprep.mubr.msk.bf16.mxu0 %vm2800_vm0, %v2799_v0 }
 0x7bd   : > { %v1195_v45 = vpop.permute.xlu0 %1194 }
 0x7be   : > { %v1199_v46 = vsel %vm3079_vm3, %v1186_v63, %v1195_v45 }
 0x7bf   : > { %1204 = vrot.lane.b32.xlu0 %v1199_v46, %s2802_s16 }
 0x7cc   : > { %1359 = vrot.lane.b32.xlu1 %v3070_v55, %s2805_s22 }
 0x831   : > { %v1205_v47 = vpop.permute.xlu0 %1204 }
 0x832   : > { %v1209_v48 = vsel %vm3086_vm4, %v1199_v46, %v1205_v47 }
 0x833   : > { %1214 = vrot.lane.b32.xlu1 %v1209_v48, %s2803_s27 }
 0x837   : > { %1456 = vrot.lane.b32.xlu1 %v3015_v12, %s2806_s18 }
 0x83b   : > { %1452 = vrot.lane.b32.xlu1 %v3034_v35, %s2806_s18 }
 0x848   : > { %v1336_v49 = vpop.xlane.xlu1 %1335 }
 0x849   : > { %v1340_v50 = vsub.f32 %v1332_v40, %v1336_v49 }
 0x84b   : > { %v1342_v51 = vmul.f32 1.442695, %v1340_v50 }
 0x84c   : > { %v1360_v52 = vpop.permute.xlu1 %1359 }
 0x84d   : > { %2676 = vpow2.f32 %v1342_v51  ;;  %2490 = vmatpush3.bf16.msra.mxu1 %v1360_v52 }
 0x84e   : > { %2501 = vmatprep.subr.bf16.mxu1 %v2799_v0 }
 0x857   : > { %v2677_v53 = vpop.eup %2676 }
 0x858   : > { %v1346_v56 = vsel %vm1022_vm6, %v2677_v53, 0.0 }
 0x859   : > { %1347 = vadd.xlane.f32.xlu0 %v1346_v56 }
 0x86f   : > { %1454 = vrot.lane.b32.xlu0 %v3004_v9, %s2806_s18 }
 0x88d   : > { %v1326_v58 = vpop.f32.mrb[24].mxu0 }
 0x88e   : > { %v2487_v59 = vpop.f32.mrb[25].mxu0 }
 0x88f   : > { %v1329_v60 = vpop.f32.mrb[26].mxu0 }
 0x890   : > { %v2488_v61 = vpop.f32.mrb[27].mxu0 }
 0x8a5   : > { %v1215_v62 = vpop.permute.xlu1 %1214 }
 0x8a6   : > { %v1219_v63 = vsel %vm3093_vm5, %v1209_v48, %v1215_v62 }
 0x8a7   : > { %1283 = vrot.lane.b32.xlu0 %v1219_v63, %s2804_s15 }
 0x8a9   : > { %v1457_v7 = vpop.permute.xlu1 %1456 }
 0x8aa   : > { %v1465_v8 = vsel %vm833_vm2, %v1457_v7, 0 }
 0x8ad   : > { %v1453_v11 = vpop.permute.xlu1 %1452 }
 0x8e6   : > { %v1348_v2 = vpop.xlane.xlu0 %1347 }
 0x8e7   : > { %2678 = vrcp.f32 %v1348_v2 }
 0x8ea   : > { %v1455_v1 = vpop.permute.xlu0 %1454 }
 0x8eb   : > { %v1462_v5 = vsel %vm833_vm2, %v1455_v1, 0 }
 0x8f1   : > { %v2679_v3 = vpop.eup %2678 }
 0x8f2   : > { %v1354_v4 = vmul.f32 %v2679_v3, %v2677_v53 }
 0x8f4   : > { %v1356_v6 = vpack.c.bf16 %v1354_v4, %v1354_v4 }
 0x8f6   : > { %2492 = vmatmul.mubr.msk.bf16.vlgmr.msra.gmra.mrb[16].mxu1 %vm1022_vm6, %v1356_v6 }
 0x8f7   : > { %2502 = vmatpush3.bf16.xpose.msra.mxu1 %v1462_v5  ;;  %2505 = vmatprep.mubr.msk.bf16.mxu1 %vm2800_vm0, %v2799_v0 }
 0x8f8   : > { %2503 = vmatprep.subr.bf16.mxu1 %v2799_v0 }
 0x8ff   : > { %2504 = vmatpush3.bf16.xpose.msra.mxu1 %v1465_v8 }
 0x900   : > { %2521 = vmatprep.subr.bf16.mxu1 %v2799_v0 }
 0x906   : > { %2506 = vmatmul.mubr.msk.bf16.vlgmr.msra.gmra.mrb[20].mxu1 %vm833_vm2, %v1453_v11 }
 0x907   : > { %2523 = vmatprep.mubr.msk.bf16.mxu1 %vm2800_vm0, %v2799_v0 }
 0x919   : > { %v1284_v13 = vpop.permute.xlu0 %1283 }
 0x91a   : > { %v1327_v14 = vadd.f32 %v1326_v58, %v1284_v13 }
 0x91c   : > { %v1333_v16 = vmul.f32 0.35355338, %v1327_v14 }
 0x91e   : > { %v1337_v17 = vsel %vm1022_vm6, %v1333_v16, -inf }
 0x91f   : > { %1338 = vmax.xlane.f32.xlu1 %v1337_v17 }
 0x930   : > { %1540 = vrot.lane.b32.xlu1 %v3038_v37, %s2806_s18 }
 0x934   : > { %1538 = vrot.lane.b32.xlu1 %v3050_v41, %s2806_s18 }
 0x9ac   : > { %v1339_v18 = vpop.xlane.xlu1 %1338 }
 0x9ad   : > { %v1341_v20 = vsub.f32 %v1333_v16, %v1339_v18 }
 0x9af   : > { %v1344_v21 = vmul.f32 1.442695, %v1341_v20 }
 0x9b0   : > { %v1541_v43 = vpop.permute.xlu1 %1540 }
 0x9b1   : > { %2680 = vpow2.f32 %v1344_v21  ;;  %v1550_v46 = vsel %vm833_vm2, %v1541_v43, 0 }
 0x9b4   : > { %v1539_v47 = vpop.permute.xlu1 %1538 }
 0x9bb   : > { %v2681_v22 = vpop.eup %2680 }
 0x9bc   : > { %v1349_v23 = vsel %vm1022_vm6, %v2681_v22, 0.0 }
 0x9bd   : > { %1350 = vadd.xlane.f32.xlu0 %v1349_v23 }
 0x9c9   : > { %v3203_v24 = vpop.f32.mrb[16].mxu1 }
 0x9ca   : > { %v2493_v25 = vpop.f32.mrb[17].mxu1 }
 0x9cb   : > { %v1402_v26 = vpop.f32.mrb[18].mxu1 }
 0x9cc   : > { %v2494_v28 = vpop.f32.mrb[19].mxu1 }
 0x9d3   : > { %1406 = vrot.lane.b32.xlu0 %v3068_v54, %s2805_s22 }
 0x9d9   : > { %v1501_v29 = vpop.f32.mrb[20].mxu1 }
 0x9da   : > { %1510 = vrot.lane.b32.xlu0 %v1501_v29, %s2801_s29  ;;  %v2507_v30 = vpop.f32.mrb[21].mxu1 }
 0x9db   : > { %v1504_v31 = vpop.f32.mrb[22].mxu1 }
 0x9dc   : > { %v2508_v32 = vpop.f32.mrb[23].mxu1 }
 0xa4a   : > { %v1351_v33 = vpop.xlane.xlu0 %1350 }
 0xa4b   : > { %2682 = vrcp.f32 %v1351_v33 }
 0xa4e   : > { %v1407_v34 = vpop.permute.xlu0 %1406 }
 0xa4f   : > { %2496 = vmatpush3.bf16.msra.mxu0 %v1407_v34 }
 0xa50   : > { %2509 = vmatprep.subr.bf16.mxu0 %v2799_v0 }
 0xa52   : > { %v1511_v38 = vpop.permute.xlu0 %1510 }
 0xa53   : > { %v1516_v39 = vsel %vm3079_vm3, %v1501_v29, %v1511_v38 }
 0xa54   : > { %1520 = vrot.lane.b32.xlu1 %v1516_v39, %s2802_s16 }
 0xa55   : > { %v2683_v40 = vpop.eup %2682 }
 0xa56   : > { %v1355_v42 = vmul.f32 %v2683_v40, %v2681_v22 }
 0xa58   : > { %v1357_v45 = vpack.c.bf16 %v1355_v42, %v1355_v42 }
 0xa5a   : > { %2498 = vmatmul.mubr.msk.bf16.vlgmr.msra.gmra.mrb[28].mxu0 %vm1022_vm6, %v1357_v45 }
 0xa5b   : > { %2510 = vmatpush3.bf16.xpose.msra.mxu0 %v1550_v46  ;;  %2511 = vmatprep.mubr.msk.bf16.mxu0 %vm2800_vm0, %v2799_v0 }
 0xa5c   : > { %2515 = vmatprep.subr.bf16.mxu0 %v2799_v0 }
 0xa62   : > { %2512 = vmatmul.mubr.msk.bf16.vlgmr.msra.gmra.mrb[32].mxu0 %vm833_vm2, %v1539_v47 }
 0xa63   : > { %2517 = vmatprep.mubr.msk.bf16.mxu0 %vm2800_vm0, %v2799_v0 }
 0xac6   : > { %v1521_v48 = vpop.permute.xlu1 %1520 }
 0xac7   : > { %v1526_v49 = vsel %vm3086_vm4, %v1516_v39, %v1521_v48 }
 0xac8   : > { %1530 = vrot.lane.b32.xlu0 %v1526_v49, %s2803_s27 }
 0xacc   : > { %1594 = vrot.lane.b32.xlu0 %v3036_v36, %s2806_s18 }
 0xad0   : > { %1512 = vrot.lane.b32.xlu0 %v1504_v31, %s2801_s29 }
 0xb2d   : > { %v3226_v50 = vpop.f32.mrb[28].mxu0 }
 0xb2e   : > { %v2638_v51 = vpack.i.bf16 %v3226_v50, %v3203_v24  ;;  %v2499_v52 = vpop.f32.mrb[29].mxu0 }
 0xb2f   : > { %v1449_v53 = vpop.f32.mrb[30].mxu0 }
 0xb30   : > { %v2500_v56 = vpop.f32.mrb[31].mxu0 }
 0xb35   : > { %v1586_v58 = vpop.f32.mrb[32].mxu0 }
 0xb36   : > { %v2513_v59 = vpop.f32.mrb[33].mxu0 }
 0xb37   : > { %v1589_v60 = vpop.f32.mrb[34].mxu0 }
 0xb38   : > { %v2514_v61 = vpop.f32.mrb[35].mxu0 }
 0xb3a   : > { %v1531_v62 = vpop.permute.xlu0 %1530 }
 0xb3b   : > { %v1536_v63 = vsel %vm3093_vm5, %v1526_v49, %v1531_v62 }
 0xb3c   : > { %1543 = vrot.lane.b32.xlu1 %v1536_v63, %s2804_s15 }
 0xb3e   : > { %v1595_v2 = vpop.permute.xlu0 %1594 }
 0xb3f   : > { %v1604_v3 = vsel %vm833_vm2, %v1595_v2, 0 }
 0xb40   : > { %1592 = vrot.lane.b32.xlu1 %v3059_v44, %s2806_s18  ;;  %2516 = vmatpush3.bf16.xpose.msra.mxu0 %v1604_v3 }
 0xb41   : > { %2527 = vmatprep.subr.bf16.mxu0 %v2799_v0 }
 0xb42   : > { %v1513_v1 = vpop.permute.xlu0 %1512 }
 0xb43   : > { %v1517_v4 = vsel %vm3079_vm3, %v1504_v31, %v1513_v1 }
 0xb44   : > { %1522 = vrot.lane.b32.xlu0 %v1517_v4, %s2802_s16 }
 0xbae   : > { %v1544_v5 = vpop.permute.xlu1 %1543 }
 0xbaf   : > { %v1587_v6 = vadd.f32 %v1586_v58, %v1544_v5 }
 0xbb1   : > { %v1646_v7 = vmul.f32 0.35355338, %v1587_v6 }
 0xbb2   : > { %v1593_v8 = vpop.permute.xlu1 %1592 }
 0xbb3   : > { %2518 = vmatmul.mubr.msk.bf16.vlgmr.msra.gmra.mrb[36].mxu0 %vm833_vm2, %v1593_v8  ;;  %v1648_v11 = vsel %vm1022_vm6, %v1646_v7, -inf }
 0xbb4   : > { %1649 = vmax.xlane.f32.xlu1 %v1648_v11  ;;  %2529 = vmatprep.mubr.msk.bf16.mxu0 %vm2800_vm0, %v2799_v0 }
 0xbb6   : > { %v1523_v21 = vpop.permute.xlu0 %1522 }
 0xbb7   : > { %v1527_v22 = vsel %vm3086_vm4, %v1517_v4, %v1523_v21 }
 0xbc5   : > { %1672 = vrot.lane.b32.xlu1 %v3070_v55, %s2806_s18 }
 0xbc9   : > { %1766 = vrot.lane.b32.xlu1 %v3004_v9, %s2807_s20 }
 0xbcd   : > { %1768 = vrot.lane.b32.xlu1 %v3015_v12, %s2807_s20 }
 0xc41   : > { %v1650_v13 = vpop.xlane.xlu1 %1649 }
 0xc42   : > { %v1654_v14 = vsub.f32 %v1646_v7, %v1650_v13 }
 0xc44   : > { %v1656_v16 = vmul.f32 1.442695, %v1654_v14 }
 0xc45   : > { %v1673_v17 = vpop.permute.xlu1 %1672 }
 0xc46   : > { %2684 = vpow2.f32 %v1656_v16  ;;  %2522 = vmatpush3.bf16.msra.mxu1 %v1673_v17 }
 0xc47   : > { %2533 = vmatprep.subr.bf16.mxu1 %v2799_v0 }
 0xc49   : > { %v1767_v31 = vpop.permute.xlu1 %1766 }
 0xc4a   : > { %v1774_v33 = vsel %vm833_vm2, %v1767_v31, 0 }
 0xc50   : > { %v2685_v18 = vpop.eup %2684 }
 0xc51   : > { %v1660_v20 = vsel %vm1022_vm6, %v2685_v18, 0.0 }
 0xc52   : > { %1661 = vadd.xlane.f32.xlu0 %v1660_v20 }
 0xc68   : > { %1532 = vrot.lane.b32.xlu0 %v1527_v22, %s2803_s27 }
 0xc6c   : > { %1764 = vrot.lane.b32.xlu0 %v3034_v35, %s2807_s20  ;;  %v1769_v35 = vpop.permute.xlu1 %1768 }
 0xc6d   : > { %v1777_v38 = vsel %vm833_vm2, %v1769_v35, 0 }
 0xc86   : > { %v1640_v9 = vpop.f32.mrb[36].mxu0 }
 0xc87   : > { %v2519_v12 = vpop.f32.mrb[37].mxu0 }
 0xc88   : > { %v1643_v23 = vpop.f32.mrb[38].mxu0 }
 0xc89   : > { %v2520_v25 = vpop.f32.mrb[39].mxu0 }
 0xcdf   : > { %v1662_v26 = vpop.xlane.xlu0 %1661 }
 0xce0   : > { %2686 = vrcp.f32 %v1662_v26 }
 0xce3   : > { %v1533_v28 = vpop.permute.xlu0 %1532 }
 0xce4   : > { %v1537_v29 = vsel %vm3093_vm5, %v1527_v22, %v1533_v28 }
 0xce5   : > { %1597 = vrot.lane.b32.xlu1 %v1537_v29, %s2804_s15 }
 0xce7   : > { %v1765_v39 = vpop.permute.xlu0 %1764 }
 0xcea   : > { %v2687_v30 = vpop.eup %2686 }
 0xceb   : > { %v1668_v32 = vmul.f32 %v2687_v30, %v2685_v18 }
 0xced   : > { %v1670_v34 = vpack.c.bf16 %v1668_v32, %v1668_v32 }
 0xcef   : > { %2524 = vmatmul.mubr.msk.bf16.vlgmr.msra.gmra.mrb[24].mxu1 %vm1022_vm6, %v1670_v34 }
 0xcf0   : > { %2534 = vmatpush3.bf16.xpose.msra.mxu1 %v1774_v33  ;;  %2537 = vmatprep.mubr.msk.bf16.mxu1 %vm2800_vm0, %v2799_v0 }
 0xcf1   : > { %2535 = vmatprep.subr.bf16.mxu1 %v2799_v0 }
 0xcf8   : > { %2536 = vmatpush3.bf16.xpose.msra.mxu1 %v1777_v38 }
 0xcf9   : > { %2553 = vmatprep.subr.bf16.mxu1 %v2799_v0 }
 0xcff   : > { %2538 = vmatmul.mubr.msk.bf16.vlgmr.msra.gmra.mrb[28].mxu1 %vm833_vm2, %v1765_v39 }
 0xd00   : > { %2555 = vmatprep.mubr.msk.bf16.mxu1 %vm2800_vm0, %v2799_v0 }
 0xd57   : > { %v1598_v40 = vpop.permute.xlu1 %1597 }
 0xd58   : > { %v1641_v42 = vadd.f32 %v1640_v9, %v1598_v40 }
 0xd5a   : > { %v1647_v43 = vmul.f32 0.35355338, %v1641_v42 }
 0xd5c   : > { %v1651_v45 = vsel %vm1022_vm6, %v1647_v43, -inf }
 0xd5d   : > { %1652 = vmax.xlane.f32.xlu0 %v1651_v45 }
 0xd73   : > { %1718 = vrot.lane.b32.xlu0 %v3068_v54, %s2806_s18 }
 0xd77   : > { %1850 = vrot.lane.b32.xlu0 %v3050_v41, %s2807_s20 }
 0xd7b   : > { %1904 = vrot.lane.b32.xlu0 %v3059_v44, %s2807_s20 }
 0xdc2   : > { %v3277_v46 = vpop.f32.mrb[24].mxu1 }
 0xdc3   : > { %v2525_v47 = vpop.f32.mrb[25].mxu1 }
 0xdc4   : > { %v1715_v48 = vpop.f32.mrb[26].mxu1 }
 0xdc5   : > { %v2526_v49 = vpop.f32.mrb[27].mxu1 }
 0xdd2   : > { %v1813_v52 = vpop.f32.mrb[28].mxu1 }
 0xdd3   : > { %v2539_v53 = vpop.f32.mrb[29].mxu1 }
 0xdd4   : > { %v1816_v56 = vpop.f32.mrb[30].mxu1 }
 0xdd5   : > { %1824 = vrot.lane.b32.xlu0 %v1816_v56, %s2801_s29  ;;  %v2540_v58 = vpop.f32.mrb[31].mxu1 }
 0xdea   : > { %v1653_v59 = vpop.xlane.xlu0 %1652 }
 0xdeb   : > { %v1655_v60 = vsub.f32 %v1647_v43, %v1653_v59 }
 0xded   : > { %v1658_v61 = vmul.f32 1.442695, %v1655_v60 }
 0xdee   : > { %v1719_v62 = vpop.permute.xlu0 %1718 }
 0xdef   : > { %2688 = vpow2.f32 %v1658_v61  ;;  %2528 = vmatpush3.bf16.msra.mxu0 %v1719_v62 }
 0xdf0   : > { %2541 = vmatprep.subr.bf16.mxu0 %v2799_v0 }
 0xdf2   : > { %v1851_v63 = vpop.permute.xlu0 %1850 }
 0xdf6   : > { %v1905_v2 = vpop.permute.xlu0 %1904 }
 0xdf9   : > { %v2689_v41 = vpop.eup %2688 }
 0xdfa   : > { %v1663_v44 = vsel %vm1022_vm6, %v2689_v41, 0.0 }
 0xdfb   : > { %1664 = vadd.xlane.f32.xlu1 %v1663_v44 }
 0xe0c   : > { %1852 = vrot.lane.b32.xlu1 %v3038_v37, %s2807_s20 }
 0xe10   : > { %1906 = vrot.lane.b32.xlu1 %v3036_v36, %s2807_s20 }
 0xe14   : > { %1822 = vrot.lane.b32.xlu1 %v1813_v52, %s2801_s29  ;;  %s506_s29 = sand.u32 1, %s2786_s30  }
 0xe47   : > { %v1825_v3 = vpop.permute.xlu0 %1824 }
 0xe48   : > { %v1829_v1 = vsel %vm3079_vm3, %v1816_v56, %v1825_v3  ;;  %v2666_v3 = vld [vmem:[%s3418_s12] sm:$0xff]  }
 0xe49   : > { %1834 = vrot.lane.b32.xlu0 %v1829_v1, %s2802_s16 }
 0xe88   : > { %v1665_v4 = vpop.xlane.xlu1 %1664 }
 0xe89   : > { %2690 = vrcp.f32 %v1665_v4 }
 0xe8c   : > { %v1853_v5 = vpop.permute.xlu1 %1852 }
 0xe8d   : > { %v1862_v13 = vsel %vm833_vm2, %v1853_v5, 0 }
 0xe90   : > { %v1907_v6 = vpop.permute.xlu1 %1906 }
 0xe91   : > { %v1916_v14 = vsel %vm833_vm2, %v1907_v6, 0 }
 0xe93   : > { %v2691_v7 = vpop.eup %2690 }
 0xe94   : > { %v1669_v8 = vmul.f32 %v2691_v7, %v2689_v41  ;;  %v1823_v37 = vpop.permute.xlu1 %1822  ;;  %v2667_v7 = vld [vmem:[%s3418_s12 + $0x8] sm:$0xff]  }
 0xe95   : > { %v1828_v36 = vsel %vm3079_vm3, %v1813_v52, %v1823_v37 }
 0xe96   : > { %1832 = vrot.lane.b32.xlu1 %v1828_v36, %s2802_s16  ;;  %v1671_v11 = vpack.c.bf16 %v1669_v8, %v1669_v8  ;;  %s2295_s16 = sshll.u32 %s506_s29, 4 }
 0xe97   : > { %s508_s22 = scalar_lea.vmem [#allocation5], %s2295_s16 }
 0xe98   : > { %2530 = vmatmul.mubr.msk.bf16.vlgmr.msra.gmra.mrb[40].mxu0 %vm1022_vm6, %v1671_v11  ;;  %s2191_s18 = sshll.u32 %s508_s22, 4  ;;  %s3355_s18 = int_to_ptr.vmem [resolvable:$true] %s2191_s18 }
 0xe99   : > { %2542 = vmatpush3.bf16.xpose.msra.mxu0 %v1862_v13  ;;  %2543 = vmatprep.mubr.msk.bf16.mxu0 %vm2800_vm0, %v2799_v0  ;;  %s2728_s25 = scalar_lea.vmem %s3355_s18, 256 }
 0xe9a   : > { %2547 = vmatprep.subr.bf16.mxu0 %v2799_v0  ;;  %p2729_p9 = scmp.ne.s32.totalorder %s3355_s18, %s2728_s25 }
 0xe9c   : > { %p2730_p12 = pnand %p2729_p9, %p3451_p10 }
 0xe9e   : > { %p2731_p2 = pneg %p2730_p12 }
 0xea0   : > { %2544 = vmatmul.mubr.msk.bf16.vlgmr.msra.gmra.mrb[44].mxu0 %vm833_vm2, %v1851_v63 }
 0xea1   : > { %2548 = vmatpush3.bf16.xpose.msra.mxu0 %v1916_v14  ;;  %2549 = vmatprep.mubr.msk.bf16.mxu0 %vm2800_vm0, %v2799_v0 }
 0xea2   : > { %2559 = vmatprep.subr.bf16.mxu0 %v2799_v0 }
 0xea8   : > { %2550 = vmatmul.mubr.msk.bf16.vlgmr.msra.gmra.mrb[48].mxu0 %vm833_vm2, %v1905_v2 }
 0xea9   : > { %2561 = vmatprep.mubr.msk.bf16.mxu0 %vm2800_vm0, %v2799_v0 }
 0xebb   : > { %v1835_v10 = vpop.permute.xlu0 %1834 }
 0xebc   : > { %v1839_v16 = vsel %vm3086_vm4, %v1829_v1, %v1835_v10 }
 0xebd   : > { %1844 = vrot.lane.b32.xlu0 %v1839_v16, %s2803_s27 }
 0xf08   : > { %v1833_v17 = vpop.permute.xlu1 %1832 }
 0xf09   : > { %v1838_v18 = vsel %vm3086_vm4, %v1828_v36, %v1833_v17 }
 0xf0a   : > { %1842 = vrot.lane.b32.xlu1 %v1838_v18, %s2803_s27 }
 0xf2f   : > { %v1845_v20 = vpop.permute.xlu0 %1844 }
 0xf30   : > { %v1849_v21 = vsel %vm3093_vm5, %v1839_v16, %v1845_v20 }
 0xf31   : > { %1909 = vrot.lane.b32.xlu0 %v1849_v21, %s2804_s15 }
 0xf6b   : > { %v1758_v22 = vpop.f32.mrb[40].mxu0 }
 0xf6c   : > { %v2643_v9 = vpack.i.bf16 %v1758_v22, %v3277_v46  ;;  %v2531_v12 = vpop.f32.mrb[41].mxu0 }
 0xf6d   : > { %v1761_v23 = vpop.f32.mrb[42].mxu0 }
 0xf6e   : > { %v2532_v25 = vpop.f32.mrb[43].mxu0 }
 0xf73   : > { %v1898_v26 = vpop.f32.mrb[44].mxu0 }
 0xf74   : > { %v2545_v28 = vpop.f32.mrb[45].mxu0 }
 0xf75   : > { %v1901_v29 = vpop.f32.mrb[46].mxu0 }
 0xf76   : > { %v2546_v30 = vpop.f32.mrb[47].mxu0 }
 0xf7b   : > { %v1952_v15 = vpop.f32.mrb[48].mxu0 }
 0xf7c   : > { %v2551_v31 = vpop.f32.mrb[49].mxu0  ;;  %v1843_v32 = vpop.permute.xlu1 %1842 }
 0xf7d   : > { %v1955_v33 = vpop.f32.mrb[50].mxu0  ;;  %v1848_v34 = vsel %vm3093_vm5, %v1838_v18, %v1843_v32 }
 0xf7e   : > { %v2552_v35 = vpop.f32.mrb[51].mxu0  ;;  %1855 = vrot.lane.b32.xlu1 %v1848_v34, %s2804_s15 }
 0xfa3   : > { %v1910_v38 = vpop.permute.xlu0 %1909 }
 0xfa4   : > { %v1953_v39 = vadd.f32 %v1952_v15, %v1910_v38 }
 0xfa6   : > { %v1959_v40 = vmul.f32 0.35355338, %v1953_v39 }
 0xfa8   : > { %v1963_v42 = vsel %vm1022_vm6, %v1959_v40, -inf }
 0xfa9   : > { %1964 = vmax.xlane.f32.xlu0 %v1963_v42 }
 0xff0   : > { %v1856_v43 = vpop.permute.xlu1 %1855 }
 0xff1   : > { %v1899_v45 = vadd.f32 %v1898_v26, %v1856_v43 }
 0xff3   : > { %v1958_v46 = vmul.f32 0.35355338, %v1899_v45 }
 0xff5   : > { %v1960_v47 = vsel %vm1022_vm6, %v1958_v46, -inf }
 0xff6   : > { %1961 = vmax.xlane.f32.xlu1 %v1960_v47 }
0x1036   : > { %v1965_v48 = vpop.xlane.xlu0 %1964 }
0x1037   : > { %v1967_v49 = vsub.f32 %v1959_v40, %v1965_v48 }
0x1039   : > { %v1970_v52 = vmul.f32 1.442695, %v1967_v49 }
0x103b   : > { %2692 = vpow2.f32 %v1970_v52 }
0x1045   : > { %v2693_v19 = vpop.eup %2692 }
0x1046   : > { %v1975_v53 = vsel %vm1022_vm6, %v2693_v19, 0.0 }
0x1047   : > { %1976 = vadd.xlane.f32.xlu1 %v1975_v53 }
0x1058   : > { %2030 = vrot.lane.b32.xlu1 %v3068_v54, %s2807_s20 }
0x105c   : > { %2639 = vrot.lane.b32.xlu1 %v2638_v51, %s2808_s19 }
0x1083   : > { %v1962_v56 = vpop.xlane.xlu1 %1961 }
0x1084   : > { %v1966_v58 = vsub.f32 %v1958_v46, %v1962_v56 }
0x1086   : > { %v1968_v59 = vmul.f32 1.442695, %v1966_v58 }
0x1088   : > { %2694 = vpow2.f32 %v1968_v59 }
0x1092   : > { %v2695_v60 = vpop.eup %2694 }
0x1093   : > { %v1972_v61 = vsel %vm1022_vm6, %v2695_v60, 0.0 }
0x1094   : > { %1973 = vadd.xlane.f32.xlu0 %v1972_v61 }
0x10aa   : > { %1984 = vrot.lane.b32.xlu0 %v3070_v55, %s2807_s20  ;;  %s2354_s20 = sshll.u32 %s2909_s17, 8  ;;  %s3364_s17 = scalar_lea.sflag [#allocation4], %s506_s29 }
0x10ab   : > { %s3361_s21 = scalar_lea.hbm %s3420_s14, %s2354_s20 }
0x10ae   : > { %2644 = vrot.lane.b32.xlu0 %v2643_v9, %s2809_s24 }
0x10d4   : > { %v1977_v54 = vpop.xlane.xlu1 %1976 }
0x10d5   : > { %2696 = vrcp.f32 %v1977_v54 }
0x10d8   : > { %v2031_v62 = vpop.permute.xlu1 %2030 }
0x10d9   : > { %2560 = vmatpush3.bf16.msra.mxu0 %v2031_v62 }
0x10dc   : > { %v2640_v14 = vpop.permute.xlu1 %2639 }
0x10dd   : > { %v2642_v16 = vunpack.i.h.bf16 %v2640_v14 }
0x10df   : > { %v2697_v41 = vpop.eup %2696  ;;  %v2101_v21 = vsel %vm833_vm2, %v3162_v27, %v2642_v16  ;;  %v2345_v27 = vld [vmem:[%s3419_s13] ss:$0 sm:$0xff] }
0x10e0   : > { %v1981_v24 = vmul.f32 %v2697_v41, %v2693_v19 }
0x10e2   : > { %v1983_v50 = vpack.c.bf16 %v1981_v24, %v1981_v24 }
0x10e4   : > { %2562 = vmatmul.mubr.msk.bf16.vlgmr.msra.gmra.mrb[52].mxu0 %vm1022_vm6, %v1983_v50 }
0x1121   : > { %v1974_v51 = vpop.xlane.xlu0 %1973 }
0x1122   : > { %2698 = vrcp.f32 %v1974_v51 }
0x1125   : > { %v1985_v44 = vpop.permute.xlu0 %1984 }
0x1126   : > { %2554 = vmatpush3.bf16.msra.mxu1 %v1985_v44 }
0x1127   : > { %2565 = vmatprep.subr.bf16.mxu1 %v2799_v0 }
0x1129   : > { %v2645_v10 = vpop.permute.xlu0 %2644 }
0x112a   : > { %v2647_v17 = vunpack.i.h.bf16 %v2645_v10  ;;  %v2646_v18 = vunpack.i.l.bf16 %v2645_v10 }
0x112c   : > { %v2699_v63 = vpop.eup %2698  ;;  %v2103_v23 = vsel %vm1022_vm6, %v2101_v21, %v2647_v17 }
0x112d   : > { %v1980_v2 = vmul.f32 %v2699_v63, %v2695_v60 }
0x112f   : > { %v1982_v55 = vpack.c.bf16 %v1980_v2, %v1980_v2 }
0x1131   : > { %2556 = vmatmul.mubr.msk.bf16.vlgmr.msra.gmra.mrb[32].mxu1 %vm1022_vm6, %v1982_v55 }
0x1132   : > { %2569 = vmatprep.mubr.msk.bf16.mxu1 %vm2800_vm0, %v2799_v0  ;;  %2566 = vmatpush3.bf16.msra.mxu1 %v2666_v3 }
0x1133   : > { %2567 = vmatprep.subr.bf16.mxu1 %v2799_v0  ;;  %v2641_v0 = vunpack.i.l.bf16 %v2640_v14 }
0x1135   : > { %v2100_v22 = vsel %vm833_vm2, %v3132_v57, %v2641_v0 }
0x1136   : > { %2568 = vmatpush3.bf16.msra.mxu1 %v2667_v7  ;;  %v2102_v25 = vsel %vm1022_vm6, %v2100_v22, %v2646_v18 }
0x11b7   : > { %v2070_v1 = vpop.f32.mrb[52].mxu0 }
0x11b8   : > { %v2563_v4 = vpop.f32.mrb[53].mxu0 }
0x11b9   : > { %v2073_v5 = vpop.f32.mrb[54].mxu0 }
0x11ba   : > { %v2564_v6 = vpop.f32.mrb[55].mxu0 }
0x1204   : > { %v2024_v8 = vpop.f32.mrb[32].mxu1 }
0x1205   : > { %v2648_v37 = vpack.i.bf16 %v2070_v1, %v2024_v8  ;;  %v2557_v36 = vpop.f32.mrb[33].mxu1 }
0x1206   : > { %v2027_v11 = vpop.f32.mrb[34].mxu1 }
0x1207   : > { %2649 = vrot.lane.b32.xlu1 %v2648_v37, %s2810_s3  ;;  %v2558_v13 = vpop.f32.mrb[35].mxu1  ;;  %s2732_s3 = sshll.u32 %s2811_s26, 4  ;;  %s2733_s3 = int_to_ptr.vmem [resolvable:$false] %s2732_s3 }
0x1208   : > { %s2734_s16 = scalar_lea.vmem %s2733_s3, 512  ;;  %p2735_p3 = scmp.lt.s32.totalorder %s3355_s18, %s2733_s3 }
0x1209   : > { %p2736_p4 = scmp.lt.s32.totalorder %s2734_s16, %s2728_s25 }
0x120b   : > { %p2737_p7 = por %p2736_p4, %p2735_p3 }
0x120d   : > { %p2738_p8 = pnand %p2737_p7, %p2731_p2 }
0x1279   : > { %v2650_v20 = vpop.permute.xlu1 %2649 }
0x127a   : > { %v2652_v9 = vunpack.i.h.bf16 %v2650_v20  ;;  %v2651_v12 = vunpack.i.l.bf16 %v2650_v20 }
0x127c   : > { %v2106_v26 = vsel %vm2104_vm7, %v2103_v23, %v2652_v9  ;;  %v2105_v28 = vsel %vm2104_vm7, %v2102_v25, %v2651_v12 }
0x127d   : > { %v2107_v29 = vpack.c.bf16 %v2106_v26, %v2105_v28 }
0x127f   : > { %2570 = vmatmul.mubr.msk.bf16.vlgmr.msra.gmra.mrb[36].mxu1 %vm559_vm1, %v2107_v29 }
0x1352   : > { %v2168_v57 = vpop.f32.mrb[36].mxu1 }
0x1353   : > { %v2169_v30 = vadd.f32 %v2345_v27, %v2168_v57  ;;  %v2571_v15 = vpop.f32.mrb[37].mxu1 }
0x1354   : > { %v2171_v31 = vpop.f32.mrb[38].mxu1 }
0x1355   : > { %2175 = vst.msk [vmem:[%s508_s22] sm:$0xff] %vm559_vm1, %v2169_v30  ;;  %v2172_v32 = vadd.f32 %v2345_v27, %v2171_v31  ;;  %v2572_v33 = vpop.f32.mrb[39].mxu1 }
0x1357   : > { %2176 = vst.msk [vmem:[%s508_s22 + $0x8] sm:$0xff] %vm559_vm1, %v2172_v32 }
0x1358   : > { %2741 = shalt.err (!%p2738_p8)
}
0x1359   : > { %s2742_s29 = scalar_lea.hbm %s3361_s21, 256  ;;  %s2746_s22 = scalar_lea.hbm %s3420_s14, 512 }
0x135a   : > { %p2743_p11 = scmp.ne.s32.totalorder %s3361_s21, %s2742_s29  ;;  %p2747_p0 = scmp.lt.u32.totalorder %s3361_s21, %s3420_s14 }
0x135b   : > { %p2748_p5 = scmp.lt.u32.totalorder %s2746_s22, %s2742_s29  ;;  %p2750_p9 = scmp.lt.u32.totalorder %s2742_s29, %s3361_s21 }
0x135c   : > { %p2744_p13 = pnand %p2743_p11, %p3451_p10 }
0x135d   : > { %p2749_p6 = por %p2748_p5, %p2747_p0 }
0x135e   : > { %p2745_p1 = pneg %p2744_p13 }
0x135f   : > { %p2751_p12 = por %p2750_p9, %p2749_p6 }
0x1361   : > { %p2752_p2 = pnand %p2751_p12, %p2745_p1 }
0x1363   : > { %2755 = shalt.err (!%p2752_p2)
}
0x1364   : > { %s2812_s28 = smov 128  }
0x1365   : > { %2577 = dma.vmem_to_hbm [thread:$0]  (%p3451_p10), %s3355_s18, 256, %s3361_s21, %s3364_s17, %s2812_s28, %s2812_s28, %s2808_s19  }
0x1366 PF: > { %s3452_s25 = sld [smem:[#allocation10_spill]]  ;;  %s3453_s26 = sld [smem:[#allocation8_spill]] }
0x1367   : > { %s3454_s3 = sld [smem:[#allocation13_spill]] }
0x136c   : > { %p2589_p3 = scmp.ge.s32.totalorder %s3452_s25, 2  ;;  %s2206_s16 = sand.u32 1, %s3453_s26  }
0x136d   : > { %p3455_p4 = scmp.ne.s32.totalorder %s3454_s3, 0  ;;  %s2207_s29 = scalar_lea.sflag [#allocation4], %s2206_s16 }
0x136f   : > { %p2584_p7 = pnand %p2589_p3, %p3455_p4 }
0x1371   : > { %2777 = dma.done.wait (!%p2584_p7), %s2207_s29, 256  }
0x1372   : > { %2779 = vsyncadd (!%p2584_p7), %s2207_s29, 4294967040  ;;  %s3456_s16 = sld [smem:[#allocation11_spill]]  ;;  %s3457_s27 = sld [smem:[#allocation9_spill]] }
0x1373   : > { %s3458_s15 = sld [smem:[#allocation12_spill]]  ;;  %s3459_s29 = smov %s2786_s30 }
0x1378   : > { %p25_p8 = scmp.ge.s32.totalorder %s3456_s16, 4   ;;  %s3460_s30 = smov %s3457_s27 }
0x137a   :  { %27 = sbr.rel (!%p25_p8) target bundleno = 6 (0x6), region = 122 }
0x1381   :  { %2212 = vsyncpa [#allocation3], 1 }
0x1382   :  { %2214 = vsyncpa [#allocation3 + $0x1], 1 }
0x1383   :  { %2215 = vsyncpa [#allocation4], 1 }
0x1384   :  { %2217 = vsyncpa [#allocation4 + $0x1], 1 }

</bundles_post_ra>
